<compile_context>
chip_gen: v5e
topology: v5e:2x2
jax: 0.10.0
libtpu: 0.0.40
codegen_flags: <defaults>
</compile_context>

<pallas_src>
import functools

import jax
import jax.numpy as jnp
from jax.experimental import pallas as pl
from jax.experimental.pallas import tpu as pltpu


def _round_up(x, m):
    return ((x + m - 1) // m) * m


# ---------------------------------------------------------------------------
# Kernel 1: fused ensemble heads  y[g] = x @ W_all[g] + b_all[g]
#   grid = (BN row-tiles, G models); bf16 operands, f32 accumulation,
#   bf16 writeback of the fused output + a small f32 output with the CA-trace
#   columns (used by the selection kernel).
# ---------------------------------------------------------------------------
def _fused_heads_kernel(x_ref, w_ref, b_ref, o_ref, tr_ref, *, toff):
    y = jnp.dot(x_ref[...], w_ref[...], preferred_element_type=jnp.float32)
    y = y + b_ref[...]
    o_ref[...] = y.astype(o_ref.dtype)            # bf16 writeback (writeback-bound)
    tr_ref[...] = y[:, toff:toff + 3]             # CA-trace xyz stays f32 for selection


def ensemble_heads(x2d, w_all, b_all, toff, *, tm_max=512):
    """x2d: (BN, H) bf16; w_all: (G, Hp, Dp) bf16; b_all: (G, Dp) f32
    -> out: (G, BN, Dp) bf16, trace: (G, BN, 3) f32."""
    G, Hp, Dp = w_all.shape
    BN, Hin = x2d.shape
    if Hin != Hp:                                  # zero-pad contraction dim once
        x2d = jnp.pad(x2d, ((0, 0), (0, Hp - Hin)))
    # balanced row tiles: waste < 16 rows per tile instead of up to tm_max-1
    n_tiles = max(1, -(-BN // tm_max))
    tm = _round_up(-(-BN // n_tiles), 16)          # bf16 sublane granule
    BNp = n_tiles * tm
    if BNp != BN:
        x2d = jnp.pad(x2d, ((0, BNp - BN), (0, 0)))
    b3 = b_all.reshape(G, 1, Dp)

    out, trace = pl.pallas_call(
        functools.partial(_fused_heads_kernel, toff=toff),
        out_shape=(jax.ShapeDtypeStruct((G, BNp, Dp), jnp.bfloat16),
                   jax.ShapeDtypeStruct((G, BNp, 3), jnp.float32)),
        grid=(n_tiles, G),
        in_specs=[
            pl.BlockSpec((tm, Hp), lambda i, g: (i, 0)),
            pl.BlockSpec((None, Hp, Dp), lambda i, g: (g, 0, 0)),
            pl.BlockSpec((None, 1, Dp), lambda i, g: (g, 0, 0)),
        ],
        out_specs=(
            pl.BlockSpec((None, tm, Dp), lambda i, g: (g, i, 0)),
            pl.BlockSpec((None, tm, 3), lambda i, g: (g, i, 0)),
        ),
        compiler_params=pltpu.CompilerParams(
            # row-tile axis leads and is parallel -> even megacore split on v7x
            dimension_semantics=("parallel", "arbitrary")),
    )(x2d, w_all, b3)
    if BNp != BN:
        out, trace = out[:, :BN], trace[:, :BN]
    return out, trace


# ---------------------------------------------------------------------------
# Kernel 2: fused ensemble selection
#   traces_t: (B, M, 3, N) f32  ->  rmsd: (B, M) f32
#   centering + 3x3 cross-covariance (9 lane reductions) + Horn-quaternion Kabsch
#   (shifted power iteration on the 4x4 matrix) + aligned RMSD, all in one launch.
# ---------------------------------------------------------------------------
_POWER_ITERS = 96


def _select_kernel(tr_ref, rmsd_ref):
    # TODO(synk): for very large N (>~1024) add an internal N-chunk fori_loop for the
    #             reductions to bound live vreg/VMEM temporaries.
    tr = tr_ref[...]                                       # (B, M, 3, N)
    cen = tr - jnp.mean(tr, axis=-1, keepdims=True)        # center over residues (lanes)
    p0 = cen[:, 0]                                         # (B, 3, N)  reference model
    pm = cen[:, 1:]                                        # (B, M-1, 3, N)

    # 3x3 cross-covariance vs model 0: one lane reduction per entry, no 4-D broadcast.
    c = [[jnp.sum(pm[:, :, i, :] * p0[:, j, :][:, None, :], axis=-1)
          for j in range(3)] for i in range(3)]            # each (B, M-1)
    sxx, sxy, sxz = c[0]
    syx, syy, syz = c[1]
    szx, szy, szz = c[2]

    # Horn's symmetric 4x4 quaternion matrix K (per batch, per model).
    k00 = sxx + syy + szz
    k01 = syz - szy
    k02 = szx - sxz
    k03 = sxy - syx
    k11 = sxx - syy - szz
    k12 = sxy + syx
    k13 = szx + sxz
    k22 = -sxx + syy - szz
    k23 = syz + szy
    k33 = -sxx - syy + szz
    # Shift by 0.5*||K||_F (= ||C||_F >= s3) so the max eigenvalue dominates in
    # magnitude even when det(C) < 0; power iteration then converges to it.
    fro = jnp.sqrt(k00 * k00 + k11 * k11 + k22 * k22 + k33 * k33
                   + 2.0 * (k01 * k01 + k02 * k02 + k03 * k03
                            + k12 * k12 + k13 * k13 + k23 * k23))
    shift = 0.5 * fro + 1e-12
    d00, d11, d22, d33 = k00 + shift, k11 + shift, k22 + shift, k33 + shift

    def power_step(_, q):
        q0, q1, q2, q3 = q
        r0 = d00 * q0 + k01 * q1 + k02 * q2 + k03 * q3
        r1 = k01 * q0 + d11 * q1 + k12 * q2 + k13 * q3
        r2 = k02 * q0 + k12 * q1 + d22 * q2 + k23 * q3
        r3 = k03 * q0 + k13 * q1 + k23 * q2 + d33 * q3
        inv = jax.lax.rsqrt(r0 * r0 + r1 * r1 + r2 * r2 + r3 * r3 + 1e-30)
        return (r0 * inv, r1 * inv, r2 * inv, r3 * inv)

    ones = jnp.ones_like(k00)
    qw, qx, qy, qz = jax.lax.fori_loop(
        0, _POWER_ITERS, power_step,
        (ones, 0.3 * ones, 0.25 * ones, 0.2 * ones))

    # Proper rotation from the unit quaternion (aligned point = R @ point).
    rot = (
        (1.0 - 2.0 * (qy * qy + qz * qz), 2.0 * (qx * qy - qw * qz), 2.0 * (qx * qz + qw * qy)),
        (2.0 * (qx * qy + qw * qz), 1.0 - 2.0 * (qx * qx + qz * qz), 2.0 * (qy * qz - qw * qx)),
        (2.0 * (qx * qz - qw * qy), 2.0 * (qy * qz + qw * qx), 1.0 - 2.0 * (qx * qx + qy * qy)),
    )

    # Aligned coordinates per axis j for all M models (model 0 keeps identity).
    al = []
    for j in range(3):
        alj = (rot[j][0][:, :, None] * pm[:, :, 0, :]
               + rot[j][1][:, :, None] * pm[:, :, 1, :]
               + rot[j][2][:, :, None] * pm[:, :, 2, :])           # (B, M-1, N)
        al.append(jnp.concatenate([p0[:, j, :][:, None, :], alj], axis=1))  # (B, M, N)

    m0 = jnp.mean(al[0], axis=1, keepdims=True)
    m1 = jnp.mean(al[1], axis=1, keepdims=True)
    m2 = jnp.mean(al[2], axis=1, keepdims=True)
    sq = (al[0] - m0) ** 2 + (al[1] - m1) ** 2 + (al[2] - m2) ** 2   # (B, M, N)
    rmsd_ref[...] = jnp.mean(sq, axis=-1)                            # (B, M)


def select_rmsd(traces_t):
    B, M, _, N = traces_t.shape
    return pl.pallas_call(
        _select_kernel,
        out_shape=jax.ShapeDtypeStruct((B, M), jnp.float32),
        grid=(1,),
        in_specs=[pl.BlockSpec((B, M, 3, N), lambda i: (0, 0, 0, 0))],
        out_specs=pl.BlockSpec((B, M), lambda i: (0, 0)),
    )(traces_t)


# ---------------------------------------------------------------------------
# Synthetic StructureModule ensemble parameters (deterministic init) + fusion
# ---------------------------------------------------------------------------
def init_params(key, M, L, H, A, P):
    ks = jax.random.split(key, 6)
    s = 1.0 / jnp.sqrt(jnp.float32(H))
    return {
        "w_single": jax.random.normal(ks[0], (M, H, H), jnp.float32) * s,
        "b_single": jax.random.normal(ks[1], (M, H), jnp.float32) * 0.1,
        "w_plddt": jax.random.normal(ks[2], (M, H, P), jnp.float32) * s,
        "b_plddt": jax.random.normal(ks[3], (M, P), jnp.float32) * 0.1,
        "w_pos": jax.random.normal(ks[4], (M, L, H, A * 3), jnp.float32) * s,
        "b_pos": jax.random.normal(ks[5], (M, L, A * 3), jnp.float32) * 0.1,
    }


def fuse_head_params(raw):
    """Concatenate all per-model heads along the output dim, pad to lane-dense widths,
    cast weights to bf16 once (biases stay f32).  Also record the CA-trace offset."""
    M, H, Hs = raw["w_single"].shape
    P = raw["w_plddt"].shape[-1]
    _, L, _, A3 = raw["w_pos"].shape
    w_pos = jnp.transpose(raw["w_pos"], (0, 2, 1, 3)).reshape(M, H, L * A3)
    b_pos = raw["b_pos"].reshape(M, L * A3)
    w_all = jnp.concatenate([raw["w_single"], raw["w_plddt"], w_pos], axis=-1)
    b_all = jnp.concatenate([raw["b_single"], raw["b_plddt"], b_pos], axis=-1)
    D = w_all.shape[-1]
    Dp = _round_up(D, 128)                # lane-dense output (no masked vst on Dp)
    Hp = _round_up(H, 128)                # lane-dense bf16 contraction dim
    w_all = jnp.pad(w_all, ((0, 0), (0, Hp - H), (0, Dp - D))).astype(jnp.bfloat16)
    b_all = jnp.pad(b_all, ((0, 0), (0, Dp - D))).astype(jnp.float32)
    toff = Hs + P + (L - 1) * A3          # final block, atom 0, xyz columns
    meta = {"H": H, "Hs": Hs, "P": P, "L": L, "A": A3 // 3,
            "D": D, "Dp": Dp, "Hp": Hp, "toff": toff}
    return {"w_all": w_all, "b_all": b_all, "meta": meta}


# ---------------------------------------------------------------------------
# EnsembleStructureModule.forward  (batch > 1, mask=None path)
# ---------------------------------------------------------------------------
def ensemble_structure_forward(params, inputs, aatype):
    # TODO(synk): mask != None, return_all, and the aatype.shape[0] == 1 / plddt_select
    #             branches of the reference forward are not implemented here.
    del aatype                                            # synthetic trunk ignores aatype
    meta = params["meta"]
    Hs, P, L, A = meta["Hs"], meta["P"], meta["L"], meta["A"]
    Dp, toff = meta["Dp"], meta["toff"]
    B, N, H = inputs.shape
    M = params["w_all"].shape[0]

    # --- fused per-ensemble-member heads (one Pallas matmul kernel) ---
    x2d = inputs.reshape(B * N, H).astype(jnp.bfloat16)
    out, trace = ensemble_heads(x2d, params["w_all"], params["b_all"], toff)
    # out: (M, B*N, Dp) bf16; trace: (M, B*N, 3) f32 (final-block CA xyz)

    # --- ensemble selection: fused Kabsch (Horn quaternion) + RMSD kernel ---
    traces_t = jnp.transpose(trace.reshape(M, B, N, 3), (1, 0, 3, 2))   # (B, M, 3, N)
    if M > 1:
        rmsd = select_rmsd(traces_t)                                    # (B, M)
    else:
        rmsd = jnp.zeros((B, 1), jnp.float32)
    closest = jnp.argmin(rmsd, axis=-1)                                 # (B,)

    # --- gather ONLY the per-batch closest model; slice/transpose afterwards ---
    bidx = jnp.arange(B)
    sel = out.reshape(M, B, N, Dp)[closest, bidx]                       # (B, N, Dp) bf16
    pos_sel = sel[..., Hs + P:Hs + P + L * A * 3].reshape(B, N, L, A, 3)
    result = {
        "single": sel[..., :Hs].astype(jnp.float32),                    # (B, N, Hs)
        "plddt": sel[..., Hs:Hs + P].astype(jnp.float32),               # (B, N, P)
        "positions": jnp.transpose(pos_sel, (2, 0, 1, 3, 4)).astype(jnp.float32),
    }
    aux = {"rmsd": rmsd, "closest": closest, "traces": traces_t, "heads_out": out}
    return result, aux


# ---------------------------------------------------------------------------
# Pure-JAX references (for checking the kernels)
# ---------------------------------------------------------------------------
def _det3(m):
    return (m[..., 0, 0] * (m[..., 1, 1] * m[..., 2, 2] - m[..., 1, 2] * m[..., 2, 1])
            - m[..., 0, 1] * (m[..., 1, 0] * m[..., 2, 2] - m[..., 1, 2] * m[..., 2, 0])
            + m[..., 0, 2] * (m[..., 1, 0] * m[..., 2, 1] - m[..., 1, 1] * m[..., 2, 0]))


def _reference_heads(fused, inputs):
    """Same bf16-quantized inputs/weights, exact f32 accumulation."""
    B, N, H = inputs.shape
    xb = inputs.reshape(B * N, H).astype(jnp.bfloat16).astype(jnp.float32)
    wf = fused["w_all"].astype(jnp.float32)[:, :H, :]
    out = jnp.einsum("nh,mhd->mnd", xb, wf, precision=jax.lax.Precision.HIGHEST)
    return out + fused["b_all"][:, None, :]


def _reference_select_from_traces(traces_t):
    """SVD-based Kabsch + RMSD reference on the same (B, M, 3, N) f32 traces."""
    hp = jax.lax.Precision.HIGHEST
    tr = jnp.transpose(traces_t, (0, 1, 3, 2))                      # (B, M, N, 3)
    cen = tr - jnp.mean(tr, axis=-2, keepdims=True)
    p1, p2 = cen[:, 0], cen[:, 1:]
    C = jnp.einsum("bmni,bnj->bmij", p2, p1, precision=hp)
    V, _, W = jnp.linalg.svd(C)
    U = V @ W
    V = V.at[..., -1].multiply(jnp.sign(_det3(U))[..., None])
    U = V @ W
    Bn = tr.shape[0]
    R = jnp.concatenate(
        [jnp.broadcast_to(jnp.eye(3, dtype=tr.dtype), (Bn, 1, 3, 3)), U], axis=1)
    aligned = jnp.einsum("bmni,bmij->bmnj", cen, R, precision=hp)
    mean_a = jnp.mean(aligned, axis=1, keepdims=True)
    rmsd = jnp.mean(jnp.sum((aligned - mean_a) ** 2, axis=-1), axis=-1)
    return rmsd, jnp.argmin(rmsd, axis=-1)


if __name__ == "__main__":
    M, B, N, H, A, L, P = 3, 2, 8, 32, 4, 2, 8
    key = jax.random.PRNGKey(0)
    kp, kin, kaa = jax.random.split(key, 3)
    raw_params = init_params(kp, M, L, H, A, P)
    fused = fuse_head_params(raw_params)
    inputs = jax.random.normal(kin, (B, N, H), jnp.float32)
    aatype = jax.random.randint(kaa, (B, N), 0, 20)

    fwd = jax.jit(functools.partial(ensemble_structure_forward, fused))
    result, aux = fwd(inputs, aatype)
    jax.block_until_ready((result, aux))

    meta = fused["meta"]
    Hs, toff = meta["Hs"], meta["toff"]

    # 1) fused-head Pallas matmul vs bf16-quantized f32 reference (bf16 writeback tol)
    ref_heads = _reference_heads(fused, inputs)                    # (M, B*N, Dp) f32
    assert jnp.allclose(jnp.asarray(aux["heads_out"], jnp.float32), ref_heads,
                        atol=5e-2, rtol=5e-2)

    # 2) the dedicated f32 CA-trace output matches the reference trace columns tightly
    trace_ref = jnp.transpose(ref_heads[:, :, toff:toff + 3].reshape(M, B, N, 3),
                              (1, 0, 3, 2))
    assert jnp.allclose(aux["traces"], trace_ref, atol=1e-4, rtol=1e-4)

    # 3) fused Kabsch/RMSD selection kernel vs SVD-based pure-JAX reference
    rmsd_ref, closest_ref = _reference_select_from_traces(aux["traces"])
    assert jnp.allclose(aux["rmsd"], rmsd_ref, atol=2e-3, rtol=2e-3), (aux["rmsd"], rmsd_ref)
    assert bool(jnp.all(aux["closest"] == closest_ref))

    # 4) the per-batch gather picked the right model
    cl = jax.device_get(aux["closest"])
    single_ref = ref_heads[:, :, :Hs].reshape(M, B, N, Hs)
    for b in range(B):
        assert jnp.allclose(result["single"][b], single_ref[int(cl[b]), b],
                            atol=5e-2, rtol=5e-2)

    assert result["single"].shape == (B, N, H)
    assert result["plddt"].shape == (B, N, P)
    assert result["positions"].shape == (L, B, N, A, 3)
    assert bool(jnp.all(jnp.isfinite(result["positions"])))

    print("KERNEL_OK")
</pallas_src>

<mosaic_0001>
module attributes {stable_mosaic.version = 11 : i64} {
  func.func @_fused_heads_kernel(%arg0: i32, %arg1: i32, %arg2: memref<16x128xbf16, #tpu.memory_space<vmem>>, %arg3: memref<1x128x128xbf16, #tpu.memory_space<vmem>>, %arg4: memref<1x1x128xf32, #tpu.memory_space<vmem>>, %arg5: memref<1x16x128xbf16, #tpu.memory_space<vmem>>, %arg6: memref<1x16x3xf32, #tpu.memory_space<vmem>>) attributes {dimension_semantics = [#tpu.dimension_semantics<parallel>, #tpu.dimension_semantics<arbitrary>], iteration_bounds = array<i64: 1, 3>, scalar_prefetch = 0 : i64, scratch_operands = 0 : i64, tpu.core_type = #tpu.core_type<tc>, window_params = [{transform_indices = @transform_0, window_bounds = array<i64: 16, 128>}, {transform_indices = @transform_1, window_bounds = array<i64: 1, 128, 128>}, {transform_indices = @transform_2, window_bounds = array<i64: 1, 1, 128>}, {transform_indices = @transform_3, window_bounds = array<i64: 1, 16, 128>}, {transform_indices = @transform_4, window_bounds = array<i64: 1, 16, 3>}]} {
    %c0 = arith.constant 0 : index
    %c0_0 = arith.constant 0 : index
    %0 = vector.load %arg2[%c0, %c0_0] : memref<16x128xbf16, #tpu.memory_space<vmem>>, vector<16x128xbf16>
    %c0_1 = arith.constant 0 : index
    %c0_2 = arith.constant 0 : index
    %c0_3 = arith.constant 0 : index
    %1 = vector.load %arg3[%c0_1, %c0_2, %c0_3] : memref<1x128x128xbf16, #tpu.memory_space<vmem>>, vector<1x128x128xbf16>
    %2 = vector.shape_cast %1 : vector<1x128x128xbf16> to vector<128x128xbf16>
    %cst = arith.constant dense<0.000000e+00> : vector<16x128xf32>
    %3 = tpu.matmul %0, %2, %cst {dimension_numbers = #tpu.dot_dimension_numbers<[1], [0], [0], [1], [0, 0, 1, 1], [], []>} : vector<16x128xbf16>, vector<128x128xbf16>, vector<16x128xf32> -> vector<16x128xf32>
    %c0_4 = arith.constant 0 : index
    %c0_5 = arith.constant 0 : index
    %c0_6 = arith.constant 0 : index
    %4 = vector.load %arg4[%c0_4, %c0_5, %c0_6] : memref<1x1x128xf32, #tpu.memory_space<vmem>>, vector<1x1x128xf32>
    %5 = vector.shape_cast %4 : vector<1x1x128xf32> to vector<1x128xf32>
    %6 = vector.broadcast %5 : vector<1x128xf32> to vector<16x128xf32>
    %7 = arith.addf %3, %6 : vector<16x128xf32>
    %8 = arith.truncf %7 : vector<16x128xf32> to vector<16x128xbf16>
    %c0_7 = arith.constant 0 : index
    %c0_8 = arith.constant 0 : index
    %c0_9 = arith.constant 0 : index
    %9 = vector.load %arg5[%c0_7, %c0_8, %c0_9] : memref<1x16x128xbf16, #tpu.memory_space<vmem>>, vector<1x16x128xbf16>
    %10 = vector.shape_cast %9 : vector<1x16x128xbf16> to vector<16x128xbf16>
    %11 = vector.shape_cast %8 : vector<16x128xbf16> to vector<1x16x128xbf16>
    tpu.vector_store %arg5[%c0_7, %c0_8, %c0_9], %11 {strides = array<i32>} : memref<1x16x128xbf16, #tpu.memory_space<vmem>>, vector<1x16x128xbf16>,
    %12 = vector.extract_strided_slice %7 {offsets = [0, 52], sizes = [16, 3], strides = [1, 1]} : vector<16x128xf32> to vector<16x3xf32>
    %c0_10 = arith.constant 0 : index
    %c0_11 = arith.constant 0 : index
    %c0_12 = arith.constant 0 : index
    %13 = vector.load %arg6[%c0_10, %c0_11, %c0_12] : memref<1x16x3xf32, #tpu.memory_space<vmem>>, vector<1x16x3xf32>
    %14 = vector.shape_cast %13 : vector<1x16x3xf32> to vector<16x3xf32>
    %15 = vector.shape_cast %12 : vector<16x3xf32> to vector<1x16x3xf32>
    tpu.vector_store %arg6[%c0_10, %c0_11, %c0_12], %15 {strides = array<i32>} : memref<1x16x3xf32, #tpu.memory_space<vmem>>, vector<1x16x3xf32>,
    return
  }
  func.func @transform_0(%arg0: i32, %arg1: i32) -> (i32, i32) {
    %c0_i32 = arith.constant 0 : i32
    %c0_i32_0 = arith.constant 0 : i32
    return %arg0, %c0_i32 : i32, i32
  }
  func.func @transform_1(%arg0: i32, %arg1: i32) -> (i32, i32, i32) {
    %c0_i32 = arith.constant 0 : i32
    %c0_i32_0 = arith.constant 0 : i32
    %c0_i32_1 = arith.constant 0 : i32
    return %arg1, %c0_i32, %c0_i32_0 : i32, i32, i32
  }
  func.func @transform_2(%arg0: i32, %arg1: i32) -> (i32, i32, i32) {
    %c0_i32 = arith.constant 0 : i32
    %c0_i32_0 = arith.constant 0 : i32
    %c0_i32_1 = arith.constant 0 : i32
    return %arg1, %c0_i32, %c0_i32_0 : i32, i32, i32
  }
  func.func @transform_3(%arg0: i32, %arg1: i32) -> (i32, i32, i32) {
    %c0_i32 = arith.constant 0 : i32
    %c0_i32_0 = arith.constant 0 : i32
    return %arg1, %arg0, %c0_i32 : i32, i32, i32
  }
  func.func @transform_4(%arg0: i32, %arg1: i32) -> (i32, i32, i32) {
    %c0_i32 = arith.constant 0 : i32
    %c0_i32_0 = arith.constant 0 : i32
    return %arg1, %arg0, %c0_i32 : i32, i32, i32
  }
}

module attributes {stable_mosaic.version = 11 : i64} {
  func.func @_select_kernel(%arg0: i32, %arg1: memref<2x3x3x8xf32, #tpu.memory_space<vmem>>, %arg2: memref<2x3xf32, #tpu.memory_space<vmem>>) attributes {dimension_semantics = [#tpu.dimension_semantics<arbitrary>], iteration_bounds = array<i64: 1>, scalar_prefetch = 0 : i64, scratch_operands = 0 : i64, tpu.core_type = #tpu.core_type<tc>, window_params = [{pipeline_mode = #tpu.pipeline_mode<synchronous>, transform_indices = @transform_0, window_bounds = array<i64: 2, 3, 3, 8>}, {pipeline_mode = #tpu.pipeline_mode<synchronous>, transform_indices = @transform_1, window_bounds = array<i64: 2, 3>}]} {
    %c0 = arith.constant 0 : index
    %c0_0 = arith.constant 0 : index
    %c0_1 = arith.constant 0 : index
    %c0_2 = arith.constant 0 : index
    %0 = vector.load %arg1[%c0, %c0_0, %c0_1, %c0_2] : memref<2x3x3x8xf32, #tpu.memory_space<vmem>>, vector<2x3x3x8xf32>
    %cst = arith.constant dense<0.000000e+00> : vector<2x3x3xf32>
    %1 = vector.multi_reduction <add>, %0, %cst [3] : vector<2x3x3x8xf32> to vector<2x3x3xf32>
    %2 = vector.shape_cast %1 : vector<2x3x3xf32> to vector<2x3x3x1xf32>
    %cst_3 = arith.constant 8.000000e+00 : f32
    %3 = vector.broadcast %cst_3 : f32 to vector<2x3x3x1xf32>
    %4 = arith.divf %2, %3 : vector<2x3x3x1xf32>
    %5 = vector.broadcast %4 : vector<2x3x3x1xf32> to vector<2x3x3x8xf32>
    %6 = arith.subf %0, %5 : vector<2x3x3x8xf32>
    %7 = vector.extract_strided_slice %6 {offsets = [0, 0, 0, 0], sizes = [2, 1, 3, 8], strides = [1, 1, 1, 1]} : vector<2x3x3x8xf32> to vector<2x1x3x8xf32>
    %8 = vector.shape_cast %7 : vector<2x1x3x8xf32> to vector<2x3x8xf32>
    %9 = vector.extract_strided_slice %6 {offsets = [0, 1, 0, 0], sizes = [2, 2, 3, 8], strides = [1, 1, 1, 1]} : vector<2x3x3x8xf32> to vector<2x2x3x8xf32>
    %10 = vector.extract_strided_slice %9 {offsets = [0, 0, 0, 0], sizes = [2, 2, 1, 8], strides = [1, 1, 1, 1]} : vector<2x2x3x8xf32> to vector<2x2x1x8xf32>
    %11 = vector.shape_cast %10 : vector<2x2x1x8xf32> to vector<2x2x8xf32>
    %12 = vector.extract_strided_slice %8 {offsets = [0, 0, 0], sizes = [2, 1, 8], strides = [1, 1, 1]} : vector<2x3x8xf32> to vector<2x1x8xf32>
    %13 = vector.shape_cast %12 : vector<2x1x8xf32> to vector<2x8xf32>
    %14 = vector.shape_cast %13 : vector<2x8xf32> to vector<2x1x8xf32>
    %15 = vector.broadcast %14 : vector<2x1x8xf32> to vector<2x2x8xf32>
    %16 = arith.mulf %11, %15 : vector<2x2x8xf32>
    %cst_4 = arith.constant dense<0.000000e+00> : vector<2x2xf32>
    %17 = vector.multi_reduction <add>, %16, %cst_4 [2] : vector<2x2x8xf32> to vector<2x2xf32>
    %18 = vector.extract_strided_slice %9 {offsets = [0, 0, 0, 0], sizes = [2, 2, 1, 8], strides = [1, 1, 1, 1]} : vector<2x2x3x8xf32> to vector<2x2x1x8xf32>
    %19 = vector.shape_cast %18 : vector<2x2x1x8xf32> to vector<2x2x8xf32>
    %20 = vector.extract_strided_slice %8 {offsets = [0, 1, 0], sizes = [2, 1, 8], strides = [1, 1, 1]} : vector<2x3x8xf32> to vector<2x1x8xf32>
    %21 = vector.shape_cast %20 : vector<2x1x8xf32> to vector<2x8xf32>
    %22 = vector.shape_cast %21 : vector<2x8xf32> to vector<2x1x8xf32>
    %23 = vector.broadcast %22 : vector<2x1x8xf32> to vector<2x2x8xf32>
    %24 = arith.mulf %19, %23 : vector<2x2x8xf32>
    %cst_5 = arith.constant dense<0.000000e+00> : vector<2x2xf32>
    %25 = vector.multi_reduction <add>, %24, %cst_5 [2] : vector<2x2x8xf32> to vector<2x2xf32>
    %26 = vector.extract_strided_slice %9 {offsets = [0, 0, 0, 0], sizes = [2, 2, 1, 8], strides = [1, 1, 1, 1]} : vector<2x2x3x8xf32> to vector<2x2x1x8xf32>
    %27 = vector.shape_cast %26 : vector<2x2x1x8xf32> to vector<2x2x8xf32>
    %28 = vector.extract_strided_slice %8 {offsets = [0, 2, 0], sizes = [2, 1, 8], strides = [1, 1, 1]} : vector<2x3x8xf32> to vector<2x1x8xf32>
    %29 = vector.shape_cast %28 : vector<2x1x8xf32> to vector<2x8xf32>
    %30 = vector.shape_cast %29 : vector<2x8xf32> to vector<2x1x8xf32>
    %31 = vector.broadcast %30 : vector<2x1x8xf32> to vector<2x2x8xf32>
    %32 = arith.mulf %27, %31 : vector<2x2x8xf32>
    %cst_6 = arith.constant dense<0.000000e+00> : vector<2x2xf32>
    %33 = vector.multi_reduction <add>, %32, %cst_6 [2] : vector<2x2x8xf32> to vector<2x2xf32>
    %34 = vector.extract_strided_slice %9 {offsets = [0, 0, 1, 0], sizes = [2, 2, 1, 8], strides = [1, 1, 1, 1]} : vector<2x2x3x8xf32> to vector<2x2x1x8xf32>
    %35 = vector.shape_cast %34 : vector<2x2x1x8xf32> to vector<2x2x8xf32>
    %36 = vector.extract_strided_slice %8 {offsets = [0, 0, 0], sizes = [2, 1, 8], strides = [1, 1, 1]} : vector<2x3x8xf32> to vector<2x1x8xf32>
    %37 = vector.shape_cast %36 : vector<2x1x8xf32> to vector<2x8xf32>
    %38 = vector.shape_cast %37 : vector<2x8xf32> to vector<2x1x8xf32>
    %39 = vector.broadcast %38 : vector<2x1x8xf32> to vector<2x2x8xf32>
    %40 = arith.mulf %35, %39 : vector<2x2x8xf32>
    %cst_7 = arith.constant dense<0.000000e+00> : vector<2x2xf32>
    %41 = vector.multi_reduction <add>, %40, %cst_7 [2] : vector<2x2x8xf32> to vector<2x2xf32>
    %42 = vector.extract_strided_slice %9 {offsets = [0, 0, 1, 0], sizes = [2, 2, 1, 8], strides = [1, 1, 1, 1]} : vector<2x2x3x8xf32> to vector<2x2x1x8xf32>
    %43 = vector.shape_cast %42 : vector<2x2x1x8xf32> to vector<2x2x8xf32>
    %44 = vector.extract_strided_slice %8 {offsets = [0, 1, 0], sizes = [2, 1, 8], strides = [1, 1, 1]} : vector<2x3x8xf32> to vector<2x1x8xf32>
    %45 = vector.shape_cast %44 : vector<2x1x8xf32> to vector<2x8xf32>
    %46 = vector.shape_cast %45 : vector<2x8xf32> to vector<2x1x8xf32>
    %47 = vector.broadcast %46 : vector<2x1x8xf32> to vector<2x2x8xf32>
    %48 = arith.mulf %43, %47 : vector<2x2x8xf32>
    %cst_8 = arith.constant dense<0.000000e+00> : vector<2x2xf32>
    %49 = vector.multi_reduction <add>, %48, %cst_8 [2] : vector<2x2x8xf32> to vector<2x2xf32>
    %50 = vector.extract_strided_slice %9 {offsets = [0, 0, 1, 0], sizes = [2, 2, 1, 8], strides = [1, 1, 1, 1]} : vector<2x2x3x8xf32> to vector<2x2x1x8xf32>
    %51 = vector.shape_cast %50 : vector<2x2x1x8xf32> to vector<2x2x8xf32>
    %52 = vector.extract_strided_slice %8 {offsets = [0, 2, 0], sizes = [2, 1, 8], strides = [1, 1, 1]} : vector<2x3x8xf32> to vector<2x1x8xf32>
    %53 = vector.shape_cast %52 : vector<2x1x8xf32> to vector<2x8xf32>
    %54 = vector.shape_cast %53 : vector<2x8xf32> to vector<2x1x8xf32>
    %55 = vector.broadcast %54 : vector<2x1x8xf32> to vector<2x2x8xf32>
    %56 = arith.mulf %51, %55 : vector<2x2x8xf32>
    %cst_9 = arith.constant dense<0.000000e+00> : vector<2x2xf32>
    %57 = vector.multi_reduction <add>, %56, %cst_9 [2] : vector<2x2x8xf32> to vector<2x2xf32>
    %58 = vector.extract_strided_slice %9 {offsets = [0, 0, 2, 0], sizes = [2, 2, 1, 8], strides = [1, 1, 1, 1]} : vector<2x2x3x8xf32> to vector<2x2x1x8xf32>
    %59 = vector.shape_cast %58 : vector<2x2x1x8xf32> to vector<2x2x8xf32>
    %60 = vector.extract_strided_slice %8 {offsets = [0, 0, 0], sizes = [2, 1, 8], strides = [1, 1, 1]} : vector<2x3x8xf32> to vector<2x1x8xf32>
    %61 = vector.shape_cast %60 : vector<2x1x8xf32> to vector<2x8xf32>
    %62 = vector.shape_cast %61 : vector<2x8xf32> to vector<2x1x8xf32>
    %63 = vector.broadcast %62 : vector<2x1x8xf32> to vector<2x2x8xf32>
    %64 = arith.mulf %59, %63 : vector<2x2x8xf32>
    %cst_10 = arith.constant dense<0.000000e+00> : vector<2x2xf32>
    %65 = vector.multi_reduction <add>, %64, %cst_10 [2] : vector<2x2x8xf32> to vector<2x2xf32>
    %66 = vector.extract_strided_slice %9 {offsets = [0, 0, 2, 0], sizes = [2, 2, 1, 8], strides = [1, 1, 1, 1]} : vector<2x2x3x8xf32> to vector<2x2x1x8xf32>
    %67 = vector.shape_cast %66 : vector<2x2x1x8xf32> to vector<2x2x8xf32>
    %68 = vector.extract_strided_slice %8 {offsets = [0, 1, 0], sizes = [2, 1, 8], strides = [1, 1, 1]} : vector<2x3x8xf32> to vector<2x1x8xf32>
    %69 = vector.shape_cast %68 : vector<2x1x8xf32> to vector<2x8xf32>
    %70 = vector.shape_cast %69 : vector<2x8xf32> to vector<2x1x8xf32>
    %71 = vector.broadcast %70 : vector<2x1x8xf32> to vector<2x2x8xf32>
    %72 = arith.mulf %67, %71 : vector<2x2x8xf32>
    %cst_11 = arith.constant dense<0.000000e+00> : vector<2x2xf32>
    %73 = vector.multi_reduction <add>, %72, %cst_11 [2] : vector<2x2x8xf32> to vector<2x2xf32>
    %74 = vector.extract_strided_slice %9 {offsets = [0, 0, 2, 0], sizes = [2, 2, 1, 8], strides = [1, 1, 1, 1]} : vector<2x2x3x8xf32> to vector<2x2x1x8xf32>
    %75 = vector.shape_cast %74 : vector<2x2x1x8xf32> to vector<2x2x8xf32>
    %76 = vector.extract_strided_slice %8 {offsets = [0, 2, 0], sizes = [2, 1, 8], strides = [1, 1, 1]} : vector<2x3x8xf32> to vector<2x1x8xf32>
    %77 = vector.shape_cast %76 : vector<2x1x8xf32> to vector<2x8xf32>
    %78 = vector.shape_cast %77 : vector<2x8xf32> to vector<2x1x8xf32>
    %79 = vector.broadcast %78 : vector<2x1x8xf32> to vector<2x2x8xf32>
    %80 = arith.mulf %75, %79 : vector<2x2x8xf32>
    %cst_12 = arith.constant dense<0.000000e+00> : vector<2x2xf32>
    %81 = vector.multi_reduction <add>, %80, %cst_12 [2] : vector<2x2x8xf32> to vector<2x2xf32>
    %82 = arith.addf %17, %49 : vector<2x2xf32>
    %83 = arith.addf %82, %81 : vector<2x2xf32>
    %84 = arith.subf %57, %73 : vector<2x2xf32>
    %85 = arith.subf %65, %33 : vector<2x2xf32>
    %86 = arith.subf %25, %41 : vector<2x2xf32>
    %87 = arith.subf %17, %49 : vector<2x2xf32>
    %88 = arith.subf %87, %81 : vector<2x2xf32>
    %89 = arith.addf %25, %41 : vector<2x2xf32>
    %90 = arith.addf %65, %33 : vector<2x2xf32>
    %cst_13 = arith.constant 0.000000e+00 : f32
    %91 = vector.broadcast %cst_13 : f32 to vector<2x2xf32>
    %92 = arith.subf %91, %17 : vector<2x2xf32>
    %93 = arith.addf %92, %49 : vector<2x2xf32>
    %94 = arith.subf %93, %81 : vector<2x2xf32>
    %95 = arith.addf %57, %73 : vector<2x2xf32>
    %cst_14 = arith.constant 0.000000e+00 : f32
    %96 = vector.broadcast %cst_14 : f32 to vector<2x2xf32>
    %97 = arith.subf %96, %17 : vector<2x2xf32>
    %98 = arith.subf %97, %49 : vector<2x2xf32>
    %99 = arith.addf %98, %81 : vector<2x2xf32>
    %100 = arith.mulf %83, %83 : vector<2x2xf32>
    %101 = arith.mulf %88, %88 : vector<2x2xf32>
    %102 = arith.addf %100, %101 : vector<2x2xf32>
    %103 = arith.mulf %94, %94 : vector<2x2xf32>
    %104 = arith.addf %102, %103 : vector<2x2xf32>
    %105 = arith.mulf %99, %99 : vector<2x2xf32>
    %106 = arith.addf %104, %105 : vector<2x2xf32>
    %107 = arith.mulf %84, %84 : vector<2x2xf32>
    %108 = arith.mulf %85, %85 : vector<2x2xf32>
    %109 = arith.addf %107, %108 : vector<2x2xf32>
    %110 = arith.mulf %86, %86 : vector<2x2xf32>
    %111 = arith.addf %109, %110 : vector<2x2xf32>
    %112 = arith.mulf %89, %89 : vector<2x2xf32>
    %113 = arith.addf %111, %112 : vector<2x2xf32>
    %114 = arith.mulf %90, %90 : vector<2x2xf32>
    %115 = arith.addf %113, %114 : vector<2x2xf32>
    %116 = arith.mulf %95, %95 : vector<2x2xf32>
    %117 = arith.addf %115, %116 : vector<2x2xf32>
    %cst_15 = arith.constant 2.000000e+00 : f32
    %118 = vector.broadcast %cst_15 : f32 to vector<2x2xf32>
    %119 = arith.mulf %118, %117 : vector<2x2xf32>
    %120 = arith.addf %106, %119 : vector<2x2xf32>
    %121 = math.sqrt %120 : vector<2x2xf32>
    %cst_16 = arith.constant 5.000000e-01 : f32
    %122 = vector.broadcast %cst_16 : f32 to vector<2x2xf32>
    %123 = arith.mulf %122, %121 : vector<2x2xf32>
    %cst_17 = arith.constant 9.99999996E-13 : f32
    %124 = vector.broadcast %cst_17 : f32 to vector<2x2xf32>
    %125 = arith.addf %123, %124 : vector<2x2xf32>
    %126 = arith.addf %83, %125 : vector<2x2xf32>
    %127 = arith.addf %88, %125 : vector<2x2xf32>
    %128 = arith.addf %94, %125 : vector<2x2xf32>
    %129 = arith.addf %99, %125 : vector<2x2xf32>
    %cst_18 = arith.constant 1.000000e+00 : f32
    %130 = vector.broadcast %cst_18 : f32 to vector<2x2xf32>
    %cst_19 = arith.constant 3.000000e-01 : f32
    %131 = vector.broadcast %cst_19 : f32 to vector<2x2xf32>
    %132 = arith.mulf %131, %130 : vector<2x2xf32>
    %cst_20 = arith.constant 2.500000e-01 : f32
    %133 = vector.broadcast %cst_20 : f32 to vector<2x2xf32>
    %134 = arith.mulf %133, %130 : vector<2x2xf32>
    %cst_21 = arith.constant 2.000000e-01 : f32
    %135 = vector.broadcast %cst_21 : f32 to vector<2x2xf32>
    %136 = arith.mulf %135, %130 : vector<2x2xf32>
    %c0_i32 = arith.constant 0 : i32
    %c96_i32 = arith.constant 96 : i32
    %137 = arith.addi %c0_i32, %c96_i32 : i32
    %c1_i32 = arith.constant 1 : i32
    %138:4 = scf.for %arg3 = %c0_i32 to %137 step %c1_i32 iter_args(%arg4 = %130, %arg5 = %132, %arg6 = %134, %arg7 = %136) -> (vector<2x2xf32>, vector<2x2xf32>, vector<2x2xf32>, vector<2x2xf32>)  : i32 {
      %280 = arith.mulf %126, %arg4 : vector<2x2xf32>
      %281 = arith.mulf %84, %arg5 : vector<2x2xf32>
      %282 = arith.addf %280, %281 : vector<2x2xf32>
      %283 = arith.mulf %85, %arg6 : vector<2x2xf32>
      %284 = arith.addf %282, %283 : vector<2x2xf32>
      %285 = arith.mulf %86, %arg7 : vector<2x2xf32>
      %286 = arith.addf %284, %285 : vector<2x2xf32>
      %287 = arith.mulf %84, %arg4 : vector<2x2xf32>
      %288 = arith.mulf %127, %arg5 : vector<2x2xf32>
      %289 = arith.addf %287, %288 : vector<2x2xf32>
      %290 = arith.mulf %89, %arg6 : vector<2x2xf32>
      %291 = arith.addf %289, %290 : vector<2x2xf32>
      %292 = arith.mulf %90, %arg7 : vector<2x2xf32>
      %293 = arith.addf %291, %292 : vector<2x2xf32>
      %294 = arith.mulf %85, %arg4 : vector<2x2xf32>
      %295 = arith.mulf %89, %arg5 : vector<2x2xf32>
      %296 = arith.addf %294, %295 : vector<2x2xf32>
      %297 = arith.mulf %128, %arg6 : vector<2x2xf32>
      %298 = arith.addf %296, %297 : vector<2x2xf32>
      %299 = arith.mulf %95, %arg7 : vector<2x2xf32>
      %300 = arith.addf %298, %299 : vector<2x2xf32>
      %301 = arith.mulf %86, %arg4 : vector<2x2xf32>
      %302 = arith.mulf %90, %arg5 : vector<2x2xf32>
      %303 = arith.addf %301, %302 : vector<2x2xf32>
      %304 = arith.mulf %95, %arg6 : vector<2x2xf32>
      %305 = arith.addf %303, %304 : vector<2x2xf32>
      %306 = arith.mulf %129, %arg7 : vector<2x2xf32>
      %307 = arith.addf %305, %306 : vector<2x2xf32>
      %308 = arith.mulf %286, %286 : vector<2x2xf32>
      %309 = arith.mulf %293, %293 : vector<2x2xf32>
      %310 = arith.addf %308, %309 : vector<2x2xf32>
      %311 = arith.mulf %300, %300 : vector<2x2xf32>
      %312 = arith.addf %310, %311 : vector<2x2xf32>
      %313 = arith.mulf %307, %307 : vector<2x2xf32>
      %314 = arith.addf %312, %313 : vector<2x2xf32>
      %cst_44 = arith.constant 1.000000e-30 : f32
      %315 = vector.broadcast %cst_44 : f32 to vector<2x2xf32>
      %316 = arith.addf %314, %315 : vector<2x2xf32>
      %317 = math.rsqrt %316 : vector<2x2xf32>
      %318 = arith.mulf %286, %317 : vector<2x2xf32>
      %319 = arith.mulf %293, %317 : vector<2x2xf32>
      %320 = arith.mulf %300, %317 : vector<2x2xf32>
      %321 = arith.mulf %307, %317 : vector<2x2xf32>
      scf.yield %318, %319, %320, %321 : vector<2x2xf32>, vector<2x2xf32>, vector<2x2xf32>, vector<2x2xf32>
    }
    %139 = arith.mulf %138#2, %138#2 : vector<2x2xf32>
    %140 = arith.mulf %138#3, %138#3 : vector<2x2xf32>
    %141 = arith.addf %139, %140 : vector<2x2xf32>
    %cst_22 = arith.constant 2.000000e+00 : f32
    %142 = vector.broadcast %cst_22 : f32 to vector<2x2xf32>
    %143 = arith.mulf %142, %141 : vector<2x2xf32>
    %cst_23 = arith.constant 1.000000e+00 : f32
    %144 = vector.broadcast %cst_23 : f32 to vector<2x2xf32>
    %145 = arith.subf %144, %143 : vector<2x2xf32>
    %146 = arith.mulf %138#1, %138#2 : vector<2x2xf32>
    %147 = arith.mulf %138#0, %138#3 : vector<2x2xf32>
    %148 = arith.subf %146, %147 : vector<2x2xf32>
    %cst_24 = arith.constant 2.000000e+00 : f32
    %149 = vector.broadcast %cst_24 : f32 to vector<2x2xf32>
    %150 = arith.mulf %149, %148 : vector<2x2xf32>
    %151 = arith.mulf %138#1, %138#3 : vector<2x2xf32>
    %152 = arith.mulf %138#0, %138#2 : vector<2x2xf32>
    %153 = arith.addf %151, %152 : vector<2x2xf32>
    %cst_25 = arith.constant 2.000000e+00 : f32
    %154 = vector.broadcast %cst_25 : f32 to vector<2x2xf32>
    %155 = arith.mulf %154, %153 : vector<2x2xf32>
    %156 = arith.mulf %138#1, %138#2 : vector<2x2xf32>
    %157 = arith.mulf %138#0, %138#3 : vector<2x2xf32>
    %158 = arith.addf %156, %157 : vector<2x2xf32>
    %cst_26 = arith.constant 2.000000e+00 : f32
    %159 = vector.broadcast %cst_26 : f32 to vector<2x2xf32>
    %160 = arith.mulf %159, %158 : vector<2x2xf32>
    %161 = arith.mulf %138#1, %138#1 : vector<2x2xf32>
    %162 = arith.mulf %138#3, %138#3 : vector<2x2xf32>
    %163 = arith.addf %161, %162 : vector<2x2xf32>
    %cst_27 = arith.constant 2.000000e+00 : f32
    %164 = vector.broadcast %cst_27 : f32 to vector<2x2xf32>
    %165 = arith.mulf %164, %163 : vector<2x2xf32>
    %cst_28 = arith.constant 1.000000e+00 : f32
    %166 = vector.broadcast %cst_28 : f32 to vector<2x2xf32>
    %167 = arith.subf %166, %165 : vector<2x2xf32>
    %168 = arith.mulf %138#2, %138#3 : vector<2x2xf32>
    %169 = arith.mulf %138#0, %138#1 : vector<2x2xf32>
    %170 = arith.subf %168, %169 : vector<2x2xf32>
    %cst_29 = arith.constant 2.000000e+00 : f32
    %171 = vector.broadcast %cst_29 : f32 to vector<2x2xf32>
    %172 = arith.mulf %171, %170 : vector<2x2xf32>
    %173 = arith.mulf %138#1, %138#3 : vector<2x2xf32>
    %174 = arith.mulf %138#0, %138#2 : vector<2x2xf32>
    %175 = arith.subf %173, %174 : vector<2x2xf32>
    %cst_30 = arith.constant 2.000000e+00 : f32
    %176 = vector.broadcast %cst_30 : f32 to vector<2x2xf32>
    %177 = arith.mulf %176, %175 : vector<2x2xf32>
    %178 = arith.mulf %138#2, %138#3 : vector<2x2xf32>
    %179 = arith.mulf %138#0, %138#1 : vector<2x2xf32>
    %180 = arith.addf %178, %179 : vector<2x2xf32>
    %cst_31 = arith.constant 2.000000e+00 : f32
    %181 = vector.broadcast %cst_31 : f32 to vector<2x2xf32>
    %182 = arith.mulf %181, %180 : vector<2x2xf32>
    %183 = arith.mulf %138#1, %138#1 : vector<2x2xf32>
    %184 = arith.mulf %138#2, %138#2 : vector<2x2xf32>
    %185 = arith.addf %183, %184 : vector<2x2xf32>
    %cst_32 = arith.constant 2.000000e+00 : f32
    %186 = vector.broadcast %cst_32 : f32 to vector<2x2xf32>
    %187 = arith.mulf %186, %185 : vector<2x2xf32>
    %cst_33 = arith.constant 1.000000e+00 : f32
    %188 = vector.broadcast %cst_33 : f32 to vector<2x2xf32>
    %189 = arith.subf %188, %187 : vector<2x2xf32>
    %190 = vector.shape_cast %145 : vector<2x2xf32> to vector<2x2x1xf32>
    %191 = vector.extract_strided_slice %9 {offsets = [0, 0, 0, 0], sizes = [2, 2, 1, 8], strides = [1, 1, 1, 1]} : vector<2x2x3x8xf32> to vector<2x2x1x8xf32>
    %192 = vector.shape_cast %191 : vector<2x2x1x8xf32> to vector<2x2x8xf32>
    %193 = vector.broadcast %190 : vector<2x2x1xf32> to vector<2x2x8xf32>
    %194 = arith.mulf %193, %192 : vector<2x2x8xf32>
    %195 = vector.shape_cast %150 : vector<2x2xf32> to vector<2x2x1xf32>
    %196 = vector.extract_strided_slice %9 {offsets = [0, 0, 1, 0], sizes = [2, 2, 1, 8], strides = [1, 1, 1, 1]} : vector<2x2x3x8xf32> to vector<2x2x1x8xf32>
    %197 = vector.shape_cast %196 : vector<2x2x1x8xf32> to vector<2x2x8xf32>
    %198 = vector.broadcast %195 : vector<2x2x1xf32> to vector<2x2x8xf32>
    %199 = arith.mulf %198, %197 : vector<2x2x8xf32>
    %200 = arith.addf %194, %199 : vector<2x2x8xf32>
    %201 = vector.shape_cast %155 : vector<2x2xf32> to vector<2x2x1xf32>
    %202 = vector.extract_strided_slice %9 {offsets = [0, 0, 2, 0], sizes = [2, 2, 1, 8], strides = [1, 1, 1, 1]} : vector<2x2x3x8xf32> to vector<2x2x1x8xf32>
    %203 = vector.shape_cast %202 : vector<2x2x1x8xf32> to vector<2x2x8xf32>
    %204 = vector.broadcast %201 : vector<2x2x1xf32> to vector<2x2x8xf32>
    %205 = arith.mulf %204, %203 : vector<2x2x8xf32>
    %206 = arith.addf %200, %205 : vector<2x2x8xf32>
    %207 = vector.extract_strided_slice %8 {offsets = [0, 0, 0], sizes = [2, 1, 8], strides = [1, 1, 1]} : vector<2x3x8xf32> to vector<2x1x8xf32>
    %208 = vector.shape_cast %207 : vector<2x1x8xf32> to vector<2x8xf32>
    %209 = vector.shape_cast %208 : vector<2x8xf32> to vector<2x1x8xf32>
    %210 = tpu.concatenate %209, %206 in 1 : vector<2x1x8xf32>, vector<2x2x8xf32> -> vector<2x3x8xf32>
    %211 = vector.shape_cast %160 : vector<2x2xf32> to vector<2x2x1xf32>
    %212 = vector.extract_strided_slice %9 {offsets = [0, 0, 0, 0], sizes = [2, 2, 1, 8], strides = [1, 1, 1, 1]} : vector<2x2x3x8xf32> to vector<2x2x1x8xf32>
    %213 = vector.shape_cast %212 : vector<2x2x1x8xf32> to vector<2x2x8xf32>
    %214 = vector.broadcast %211 : vector<2x2x1xf32> to vector<2x2x8xf32>
    %215 = arith.mulf %214, %213 : vector<2x2x8xf32>
    %216 = vector.shape_cast %167 : vector<2x2xf32> to vector<2x2x1xf32>
    %217 = vector.extract_strided_slice %9 {offsets = [0, 0, 1, 0], sizes = [2, 2, 1, 8], strides = [1, 1, 1, 1]} : vector<2x2x3x8xf32> to vector<2x2x1x8xf32>
    %218 = vector.shape_cast %217 : vector<2x2x1x8xf32> to vector<2x2x8xf32>
    %219 = vector.broadcast %216 : vector<2x2x1xf32> to vector<2x2x8xf32>
    %220 = arith.mulf %219, %218 : vector<2x2x8xf32>
    %221 = arith.addf %215, %220 : vector<2x2x8xf32>
    %222 = vector.shape_cast %172 : vector<2x2xf32> to vector<2x2x1xf32>
    %223 = vector.extract_strided_slice %9 {offsets = [0, 0, 2, 0], sizes = [2, 2, 1, 8], strides = [1, 1, 1, 1]} : vector<2x2x3x8xf32> to vector<2x2x1x8xf32>
    %224 = vector.shape_cast %223 : vector<2x2x1x8xf32> to vector<2x2x8xf32>
    %225 = vector.broadcast %222 : vector<2x2x1xf32> to vector<2x2x8xf32>
    %226 = arith.mulf %225, %224 : vector<2x2x8xf32>
    %227 = arith.addf %221, %226 : vector<2x2x8xf32>
    %228 = vector.extract_strided_slice %8 {offsets = [0, 1, 0], sizes = [2, 1, 8], strides = [1, 1, 1]} : vector<2x3x8xf32> to vector<2x1x8xf32>
    %229 = vector.shape_cast %228 : vector<2x1x8xf32> to vector<2x8xf32>
    %230 = vector.shape_cast %229 : vector<2x8xf32> to vector<2x1x8xf32>
    %231 = tpu.concatenate %230, %227 in 1 : vector<2x1x8xf32>, vector<2x2x8xf32> -> vector<2x3x8xf32>
    %232 = vector.shape_cast %177 : vector<2x2xf32> to vector<2x2x1xf32>
    %233 = vector.extract_strided_slice %9 {offsets = [0, 0, 0, 0], sizes = [2, 2, 1, 8], strides = [1, 1, 1, 1]} : vector<2x2x3x8xf32> to vector<2x2x1x8xf32>
    %234 = vector.shape_cast %233 : vector<2x2x1x8xf32> to vector<2x2x8xf32>
    %235 = vector.broadcast %232 : vector<2x2x1xf32> to vector<2x2x8xf32>
    %236 = arith.mulf %235, %234 : vector<2x2x8xf32>
    %237 = vector.shape_cast %182 : vector<2x2xf32> to vector<2x2x1xf32>
    %238 = vector.extract_strided_slice %9 {offsets = [0, 0, 1, 0], sizes = [2, 2, 1, 8], strides = [1, 1, 1, 1]} : vector<2x2x3x8xf32> to vector<2x2x1x8xf32>
    %239 = vector.shape_cast %238 : vector<2x2x1x8xf32> to vector<2x2x8xf32>
    %240 = vector.broadcast %237 : vector<2x2x1xf32> to vector<2x2x8xf32>
    %241 = arith.mulf %240, %239 : vector<2x2x8xf32>
    %242 = arith.addf %236, %241 : vector<2x2x8xf32>
    %243 = vector.shape_cast %189 : vector<2x2xf32> to vector<2x2x1xf32>
    %244 = vector.extract_strided_slice %9 {offsets = [0, 0, 2, 0], sizes = [2, 2, 1, 8], strides = [1, 1, 1, 1]} : vector<2x2x3x8xf32> to vector<2x2x1x8xf32>
    %245 = vector.shape_cast %244 : vector<2x2x1x8xf32> to vector<2x2x8xf32>
    %246 = vector.broadcast %243 : vector<2x2x1xf32> to vector<2x2x8xf32>
    %247 = arith.mulf %246, %245 : vector<2x2x8xf32>
    %248 = arith.addf %242, %247 : vector<2x2x8xf32>
    %249 = vector.extract_strided_slice %8 {offsets = [0, 2, 0], sizes = [2, 1, 8], strides = [1, 1, 1]} : vector<2x3x8xf32> to vector<2x1x8xf32>
    %250 = vector.shape_cast %249 : vector<2x1x8xf32> to vector<2x8xf32>
    %251 = vector.shape_cast %250 : vector<2x8xf32> to vector<2x1x8xf32>
    %252 = tpu.concatenate %251, %248 in 1 : vector<2x1x8xf32>, vector<2x2x8xf32> -> vector<2x3x8xf32>
    %cst_34 = arith.constant dense<0.000000e+00> : vector<2x8xf32>
    %253 = vector.multi_reduction <add>, %210, %cst_34 [1] : vector<2x3x8xf32> to vector<2x8xf32>
    %254 = vector.shape_cast %253 : vector<2x8xf32> to vector<2x1x8xf32>
    %cst_35 = arith.constant 3.000000e+00 : f32
    %255 = vector.broadcast %cst_35 : f32 to vector<2x1x8xf32>
    %256 = arith.divf %254, %255 : vector<2x1x8xf32>
    %cst_36 = arith.constant dense<0.000000e+00> : vector<2x8xf32>
    %257 = vector.multi_reduction <add>, %231, %cst_36 [1] : vector<2x3x8xf32> to vector<2x8xf32>
    %258 = vector.shape_cast %257 : vector<2x8xf32> to vector<2x1x8xf32>
    %cst_37 = arith.constant 3.000000e+00 : f32
    %259 = vector.broadcast %cst_37 : f32 to vector<2x1x8xf32>
    %260 = arith.divf %258, %259 : vector<2x1x8xf32>
    %cst_38 = arith.constant dense<0.000000e+00> : vector<2x8xf32>
    %261 = vector.multi_reduction <add>, %252, %cst_38 [1] : vector<2x3x8xf32> to vector<2x8xf32>
    %262 = vector.shape_cast %261 : vector<2x8xf32> to vector<2x1x8xf32>
    %cst_39 = arith.constant 3.000000e+00 : f32
    %263 = vector.broadcast %cst_39 : f32 to vector<2x1x8xf32>
    %264 = arith.divf %262, %263 : vector<2x1x8xf32>
    %265 = vector.broadcast %256 : vector<2x1x8xf32> to vector<2x3x8xf32>
    %266 = arith.subf %210, %265 : vector<2x3x8xf32>
    %267 = arith.mulf %266, %266 : vector<2x3x8xf32>
    %268 = vector.broadcast %260 : vector<2x1x8xf32> to vector<2x3x8xf32>
    %269 = arith.subf %231, %268 : vector<2x3x8xf32>
    %270 = arith.mulf %269, %269 : vector<2x3x8xf32>
    %271 = arith.addf %267, %270 : vector<2x3x8xf32>
    %272 = vector.broadcast %264 : vector<2x1x8xf32> to vector<2x3x8xf32>
    %273 = arith.subf %252, %272 : vector<2x3x8xf32>
    %274 = arith.mulf %273, %273 : vector<2x3x8xf32>
    %275 = arith.addf %271, %274 : vector<2x3x8xf32>
    %cst_40 = arith.constant dense<0.000000e+00> : vector<2x3xf32>
    %276 = vector.multi_reduction <add>, %275, %cst_40 [2] : vector<2x3x8xf32> to vector<2x3xf32>
    %cst_41 = arith.constant 8.000000e+00 : f32
    %277 = vector.broadcast %cst_41 : f32 to vector<2x3xf32>
    %278 = arith.divf %276, %277 : vector<2x3xf32>
    %c0_42 = arith.constant 0 : index
    %c0_43 = arith.constant 0 : index
    %279 = vector.load %arg2[%c0_42, %c0_43] : memref<2x3xf32, #tpu.memory_space<vmem>>, vector<2x3xf32>
    tpu.vector_store %arg2[%c0_42, %c0_43], %278 {strides = array<i32>} : memref<2x3xf32, #tpu.memory_space<vmem>>, vector<2x3xf32>,
    return
  }
  func.func @transform_0(%arg0: i32) -> (i32, i32, i32, i32) {
    %c0_i32 = arith.constant 0 : i32
    %c0_i32_0 = arith.constant 0 : i32
    %c0_i32_1 = arith.constant 0 : i32
    %c0_i32_2 = arith.constant 0 : i32
    %c0_i32_3 = arith.constant 0 : i32
    return %c0_i32, %c0_i32_0, %c0_i32_1, %c0_i32_2 : i32, i32, i32, i32
  }
  func.func @transform_1(%arg0: i32) -> (i32, i32) {
    %c0_i32 = arith.constant 0 : i32
    %c0_i32_0 = arith.constant 0 : i32
    %c0_i32_1 = arith.constant 0 : i32
    return %c0_i32, %c0_i32_0 : i32, i32
  }
}

</mosaic_0001>

<bundles_post_ra>
// kernel: ensemble_structure_forward.2
= control target key start
LH: loop header
LB: loop body
LE: loop exit
PB: predicated region body
PF: predicated region fallthrough
CT: control target
= control target key end

     0   :  { %10 = vsyncpa [#allocation3], 0  ;;  %s914_s0 = inlined_call_operand.vmem [shape: bf16[16,128], index: 0, kind: input, shape index: {}]   ;;  %s915_s1 = inlined_call_operand.hbm [shape: bf16[3,128,128], index: 1, kind: input, shape index: {}]   ;;  %s916_s2 = inlined_call_operand.vmem [shape: f32[3,1,128], index: 2, kind: input, shape index: {}]   ;;  %s917_s3 = inlined_call_operand.vmem [shape: bf16[3,16,128], index: 3, kind: output, shape index: {0}]   ;;  %s918_s4 = inlined_call_operand.vmem [shape: f32[3,16,3], index: 4, kind: output, shape index: {1}]  }
   0x1   :  { %12 = vsyncpa [#allocation3 + $0x1], 0  ;;  %s812_s15 = smov 0   ;;  %s814_s16 = smov 0  }
   0x2   :  { %s816_s17 = smov 0   ;;  %s818_s18 = smov 0  }
   0x3   :  { %s820_s19 = smov 0   ;;  %s822_s20 = smov 0  }
   0x4 LB: > { %s574_s21 = sadd.s32 4294967295, %s782_s20   ;;  %s27_s22 = sadd.s32 1, %s778_s19  ;;  %s782_s20 = sphi %s822_s20, %s18_s20   ;;  %s778_s19 = sphi %s820_s19, %s925_s19   ;;  %s774_s18 = sphi %s818_s18, %s924_s18   ;;  %s770_s17 = sphi %s816_s17, %s923_s17   ;;  %s766_s16 = sphi %s814_s16, %s922_s16   ;;  %s762_s15 = sphi %s812_s15, %s921_s15  }
   0x5   : > { %p28_p0 = scmp.ge.s32.totalorder %s27_s22, 3  ;;  %s63_s23 = sadd.s32 1, %s770_s17 }
   0x6   : > { %p70_p1 = scmp.ne.s32.totalorder %s770_s17, %s766_s16  ;;  %p71_p2 = scmp.eq.s32.totalorder %s782_s20, 0 }
   0x7   : > { %s927_s22 = smov (%p28_p0, %s27_s22), 0  ;;  %p76_p4 = scmp.ne.s32.totalorder %s766_s16, %s762_s15 }
   0x8   : > { %p848_p3 = por %p71_p2, %p70_p1  ;;  %s60_s25 = ssub.s32 %s778_s19, %s927_s22 }
   0x9   : > { %p77_p5 = scmp.eq.s32.totalorder %s574_s21, 0  ;;  %p61_p6 = scmp.eq.s32.totalorder %s60_s25, 0 }
   0xa   : > { %p649_p8 = scmp.lt.s32.totalorder %s782_s20, 3  ;;  %s191_s28 = sand.u32 1, %s770_s17  }
   0xb   : > { %p855_p7 = por %p77_p5, %p76_p4  ;;  %s626_s29 = sshll.u32 %s778_s19, 6 }
   0xc   : > { %s861_s27 = scalar_select %p61_p6, %s770_s17, %s63_s23  }
   0xd   : > { %s579_s30 = sshll.u32 %s191_s28, 6  ;;  %s200_s7 = scalar_lea.hbm %s915_s1, %s626_s29 }
   0xe   : > { %s201_s8 = sshll.u32 %s200_s7, 4  ;;  %s195_s9 = scalar_lea.vmem [#allocation2], %s579_s30  ;;  %s202_s8 = int_to_ptr.hbm [resolvable:$true] %s201_s8 }
   0xf   : > { %s203_s10 = sshll.u32 %s195_s9, 4  ;;  %p646_p9 = pnand %p649_p8, %p848_p3  ;;  %s204_s10 = int_to_ptr.vmem [resolvable:$true] %s203_s10 }
  0x10   : > { %p582_p10 = scmp.ge.s32.totalorder %s782_s20, 1  ;;  %p217_p11 = scmp.lt.s32.totalorder %s782_s20, 4 }
  0x11   : > { %s192_s11 = scalar_lea.sflag [#allocation3], %s191_s28  ;;  %s784_s12 = smov 64  }
  0x12   : > { %s785_s13 = smov 4   ;;  %p218_p12 = pnand %p582_p10, %p217_p11 }
  0x13   : > { %648 = dma.hbm_to_vmem [thread:$0]  (!%p646_p9), %s202_s8, 1024, %s204_s10, %s192_s11, %s784_s12, %s784_s12, %s785_s13  }
  0x14   : > { %221 = sbr.rel (%p218_p12) target bundleno = 310 (0x136), region = 32  ;;  %s223_s14 = sand.u32 (!%p218_p12), 1, %s766_s16  }
  0x15   : > { %s583_s15 = sshll.u32 (!%p218_p12), %s223_s14, 6  ;;  %s224_s21 = scalar_lea.sflag (!%p218_p12), [#allocation3], %s223_s14 }
  0x16   : > { %s227_s23 = scalar_lea.vmem (!%p218_p12), [#allocation2], %s583_s15 }
  0x19   : > { %757 = dma.done.wait (%p855_p7), %s224_s21, 1024  }
  0x1a   : > { %759 = vsyncadd (%p855_p7), %s224_s21, 4294966272  ;;  %p280_p13 = scmp.lt.s32.totalorder %s774_s18, 2  ;;  %v637_v0 = vld [vmem:[%s227_s23 + $0x38] sm:$0xff]  ;;  %v636_v1 = vld [vmem:[%s227_s23 + $0x30] sm:$0xff]  ;;  %s786_s30 = smov 76   ;;  %vm405_vm0 = vcmask 23552  }
  0x1b   : > { %379 = vmatpush.bf16.msra.mxu0 %v637_v0  ;;  %v635_v2 = vld [vmem:[%s227_s23 + $0x28] sm:$0xff]  ;;  %v634_v3 = vld [vmem:[%s227_s23 + $0x20] sm:$0xff]  ;;  %v633_v4 = vld [vmem:[%s227_s23 + $0x18] sm:$0xff] }
  0x1c   : > { %s929_s18 = smov (!%p280_p13, %s774_s18), 2  ;;  %v632_v5 = vld [vmem:[%s227_s23 + $0x10] sm:$0xff]  ;;  %v631_v6 = vld [vmem:[%s227_s23 + $0x8] sm:$0xff]  ;;  %v630_v7 = vld [vmem:[%s227_s23] sm:$0xff] }
  0x1d   : > { %s282_s28 = scalar_lea.vmem %s916_s2, %s929_s18  ;;  %v629_v8 = vld [vmem:[%s914_s0] sm:$0xff]  ;;  %s627_s5 = sshll.u32 %s929_s18, 3 }
  0x1e   : > { %v701_v9 = vld [vmem:[%s282_s28] ss:$0 sm:$0xff]  ;;  %s291_s8 = scalar_lea.vmem %s917_s3, %s627_s5  ;;  %s628_s9 = sshll.u32 %s929_s18, 4 }
  0x1f   : > { %380 = vmatpush.bf16.msra.mxu0 %v636_v1  ;;  %s301_s12 = scalar_lea.vmem %s918_s4, %s628_s9 }
  0x23   : > { %381 = vmatpush.bf16.msra.mxu0 %v635_v2 }
  0x27   : > { %382 = vmatpush.bf16.msra.mxu0 %v634_v3 }
  0x2b   : > { %383 = vmatpush.bf16.msra.mxu0 %v633_v4 }
  0x2f   : > { %384 = vmatpush.bf16.msra.mxu0 %v632_v5 }
  0x33   : > { %385 = vmatpush.bf16.msra.mxu0 %v631_v6 }
  0x37   : > { %386 = vmatpush.bf16.msra.mxu0 %v630_v7 }
  0x3a   : > { %387 = vmatmul.bf16.vlgmr.msra.gmra.mxu0 %v629_v8 }
  0xb7   : > { %v388_v10 = vpop.f32.mrf.mxu0 }
  0xb8   : > { %v389_v11 = vadd.f32 %v701_v9, %v388_v10 }
  0xba   : > { %399 = vrot.lane.b32.xlu0 %v389_v11, %s786_s30 }
  0xbf   : > { %v390_v12 = vpop.f32.mrf.mxu0 }
  0xc0   : > { %v391_v13 = vadd.f32 %v701_v9, %v390_v12 }
  0xc2   : > { %v641_v14 = vpack.c.bf16 %v391_v13, %v389_v11  ;;  %401 = vrot.lane.b32.xlu0 %v391_v13, %s786_s30 }
  0xc4   : > { %642 = vst [vmem:[%s291_s8] sm:$0xff] %v641_v14  }
 0x12c   : > { %v400_v15 = vpop.permute.xlu0 %399 }
 0x12d   : > { %406 = vst.msk [vmem:[%s301_s12] sm:$0xff] %vm405_vm0, %v400_v15 }
 0x134   : > { %v402_v16 = vpop.permute.xlu0 %401 }
 0x135   : > { %407 = vst.msk [vmem:[%s301_s12 + $0x8] sm:$0xff] %vm405_vm0, %v402_v16 }
 0x136 PF: > { %s18_s20 = sadd.s32 1, %s782_s20   ;;  %s921_s15 = smov %s766_s16 }
 0x137   : > { %p15_p0 = scmp.ge.s32.totalorder %s18_s20, 5   ;;  %s922_s16 = smov %s770_s17 }
 0x138   : > { %s923_s17 = smov %s861_s27  ;;  %s924_s18 = smov %s778_s19 }
 0x139   : > { %s925_s19 = smov %s927_s22  ;;  %17 = sbr.rel (!%p15_p0) target bundleno = 4 (0x4), region = 90 }
 0x13e   :  { %463 = vsyncpa [#allocation3], 1 }
 0x13f   :  { %465 = vsyncpa [#allocation3 + $0x1], 1 }

// kernel: ensemble_structure_forward.3
= control target key start
LH: loop header
LB: loop body
LE: loop exit
PB: predicated region body
PF: predicated region fallthrough
CT: control target
= control target key end

     0   :  { %vm14_vm0 = vcmask 59392   ;;  %v1197_v12 = vmov 8.0   ;;  %vm63_vm2 = vcmask 1041409   ;;  %vm120_vm3 = vcmask 1042434   ;;  %s1718_s0 = inlined_call_operand.vmem [shape: f32[2,3,3,8], index: 0, kind: input, shape index: {}]   ;;  %s1719_s1 = inlined_call_operand.vmem [shape: f32[2,3], index: 1, kind: output, shape index: {}]  }
   0x1   :  { %v8_v0 = vld [vmem:[%s1718_s0] sm:$0x7]  ;;  %v10_v1 = vld [vmem:[%s1718_s0 + $0x8] sm:$0x7]  ;;  %v9_v2 = vld [vmem:[%s1718_s0 + $0x4] sm:$0x7]  ;;  %1110 = vrcp.f32 %v1197_v12 }
   0x2   :  { %v15_v3 = vsel %vm14_vm0, %v8_v0, 0.0  ;;  %v21_v4 = vsel %vm14_vm0, %v10_v1, 0.0  ;;  %v18_v5 = vsel %vm14_vm0, %v9_v2, 0.0  ;;  %v11_v6 = vld [vmem:[%s1718_s0 + $0xc] sm:$0x7]  ;;  %vm69_vm4 = vcmask 58368  }
   0x3   :  { %16 = vadd.xlane.f32.xlu0 %v15_v3  ;;  %22 = vadd.xlane.f32.xlu1 %v21_v4  ;;  %v13_v7 = vld [vmem:[%s1718_s0 + $0x14] sm:$0x7]  ;;  %v12_v8 = vld [vmem:[%s1718_s0 + $0x10] sm:$0x7]  ;;  %v24_v9 = vsel %vm14_vm0, %v11_v6, 0.0  ;;  %vm125_vm5 = vcmask 59393  }
   0x4   :  { %19 = vadd.xlane.f32.xlu2 %v18_v5  ;;  %v30_v10 = vsel %vm14_vm0, %v13_v7, 0.0  ;;  %v27_v11 = vsel %vm14_vm0, %v12_v8, 0.0  ;;  %vm152_vm6 = vcmask 1043459   ;;  %vm157_vm7 = vcmask 60418   ;;  %s1416_s0 = smov 0  }
   0x7   :  { %v1111_v13 = vpop.eup %1110 }
   0x8   :  { %v34_v14 = vmul.f32 8.0, %v1111_v13  ;;  %vm38_vm1 = vweird.f32 %v1111_v13 }
   0xa   :  { %v35_v15 = vsub.f32 1.0, %v34_v14 }
   0xb   :  { %25 = vadd.xlane.f32.xlu0 %v24_v9  ;;  %31 = vadd.xlane.f32.xlu1 %v30_v10 }
   0xc   :  { %28 = vadd.xlane.f32.xlu2 %v27_v11  ;;  %v36_v16 = vmul.f32 %v1111_v13, %v35_v15 }
   0xe   :  { %v37_v17 = vadd.f32 %v1111_v13, %v36_v16 }
  0x10   :  { %v1234_v18 = vsel %vm38_vm1, %v1111_v13, %v37_v17 }
  0x76   :  { %v17_v19 = vpop.xlane.xlu0 %16  ;;  %v23_v20 = vpop.xlane.xlu1 %22 }
  0x77   :  { %v40_v21 = vmul.f32 %v1234_v18, %v17_v19  ;;  %v42_v22 = vmul.f32 %v1234_v18, %v23_v20  ;;  %v20_v23 = vpop.xlane.xlu2 %19 }
  0x78   :  { %v41_v24 = vmul.f32 %v1234_v18, %v20_v23 }
  0x79   :  { %v1239_v25 = vsub.f32 %v8_v0, %v40_v21  ;;  %v1241_v26 = vsub.f32 %v10_v1, %v42_v22 }
  0x7a   :  { %v1243_v27 = vsub.f32 %v9_v2, %v41_v24 }
  0x7b   :  { %v52_v28 = vperm.slane %v1239_v25, 0  ;;  %v98_v29 = vperm.slane %v1239_v25, 2  ;;  %v76_v46 = vperm.slane %v1239_v25, 1 }
  0x7d   :  { %v101_v30 = vmul.f32 %v98_v29, %v1241_v26  ;;  %v55_v31 = vmul.f32 %v52_v28, %v1241_v26  ;;  %v1250_v34 = vmul.f32 %v98_v29, %v1243_v27  ;;  %v1253_v35 = vmul.f32 %v52_v28, %v1243_v27 }
  0x7e   :  { %v26_v32 = vpop.xlane.xlu0 %25  ;;  %v32_v33 = vpop.xlane.xlu1 %31  ;;  %v79_v54 = vmul.f32 %v76_v46, %v1241_v26  ;;  %v78_v3 = vmul.f32 %v76_v46, %v1243_v27 }
  0x7f   :  { %v43_v36 = vmul.f32 %v1234_v18, %v26_v32  ;;  %v45_v37 = vmul.f32 %v1234_v18, %v32_v33  ;;  %v29_v38 = vpop.xlane.xlu2 %28  ;;  %v1257_v39 = vrot.slane %v101_v30, 7  ;;  %v62_v40 = vrot.slane %v55_v31, 7 }
  0x80   :  { %v44_v41 = vmul.f32 %v1234_v18, %v29_v38  ;;  %v86_v2 = vrot.slane %v79_v54, 7 }
  0x81   :  { %v1260_v42 = vsub.f32 %v11_v6, %v43_v36  ;;  %v1262_v43 = vsub.f32 %v13_v7, %v45_v37  ;;  %v109_v44 = vsel %vm63_vm2, %v1257_v39, %v1250_v34  ;;  %v121_v45 = vsel %vm120_vm3, %v62_v40, %v1253_v35 }
  0x82   :  { %v114_v47 = vsel %vm69_vm4, %v109_v44, 0.0  ;;  %v126_v48 = vsel %vm125_vm5, %v121_v45, 0.0  ;;  %v1274_v51 = vsub.f32 %v12_v8, %v44_v41  ;;  %v153_v4 = vsel %vm152_vm6, %v62_v40, %v1253_v35 }
  0x83   :  { %v53_v49 = vperm.slane %v1260_v42, 0  ;;  %v99_v50 = vperm.slane %v1260_v42, 2  ;;  %115 = vadd.xlane.f32.xlu0 %v114_v47  ;;  %127 = vadd.xlane.f32.xlu2 %v126_v48  ;;  %v77_v1 = vperm.slane %v1260_v42, 1  ;;  %v87_v5 = vsel %vm63_vm2, %v86_v2, %v78_v3 }
  0x84   :  { %v164_v7 = vsel %vm152_vm6, %v86_v2, %v78_v3  ;;  %v158_v8 = vsel %vm157_vm7, %v153_v4, 0.0  ;;  %v92_v9 = vsel %vm69_vm4, %v87_v5, 0.0  ;;  %v142_v20 = vsel %vm120_vm3, %v1257_v39, %v1250_v34 }
  0x85   :  { %v103_v52 = vmul.f32 %v99_v50, %v1262_v43  ;;  %v57_v53 = vmul.f32 %v53_v49, %v1262_v43  ;;  %v102_v55 = vmul.f32 %v99_v50, %v1274_v51  ;;  %v56_v57 = vmul.f32 %v53_v49, %v1274_v51 }
  0x86   :  { %v81_v6 = vmul.f32 %v77_v1, %v1262_v43  ;;  %v168_v10 = vsel %vm157_vm7, %v164_v7, 0.0  ;;  %v80_v12 = vmul.f32 %v77_v1, %v1274_v51  ;;  %v64_v21 = vsel %vm63_vm2, %v62_v40, %v1253_v35 }
  0x87   :  { %v110_v56 = vrot.slane %v103_v52, 7  ;;  %v65_v58 = vrot.slane %v57_v53, 7  ;;  %v132_v22 = vsel %vm120_vm3, %v86_v2, %v78_v3  ;;  %v146_v23 = vsel %vm125_vm5, %v142_v20, 0.0 }
  0x88   :  { %v88_v11 = vrot.slane %v81_v6, 7  ;;  %v70_v24 = vsel %vm69_vm4, %v64_v21, 0.0  ;;  %v136_v28 = vsel %vm125_vm5, %v132_v22, 0.0  ;;  %v174_v36 = vsel %vm152_vm6, %v1257_v39, %v1250_v34 }
  0x89   :  { %v111_v59 = vsel %vm63_vm2, %v110_v56, %v102_v55  ;;  %v154_v60 = vsel %vm152_vm6, %v65_v58, %v56_v57  ;;  %v122_v61 = vsel %vm120_vm3, %v65_v58, %v56_v57  ;;  %v143_v14 = vsel %vm120_vm3, %v110_v56, %v102_v55 }
  0x8a   :  { %v117_v62 = vsel %vm69_vm4, %v111_v59, 0.0  ;;  %v161_v63 = vsel %vm157_vm7, %v154_v60, 0.0  ;;  %v129_v0 = vsel %vm125_vm5, %v122_v61, 0.0  ;;  %v165_v13 = vsel %vm152_vm6, %v88_v11, %v80_v12 }
  0x8b   :  { %118 = vadd.xlane.f32.xlu1 %v117_v62  ;;  %162 = vadd.xlane.f32.xlu2 %v161_v63  ;;  %v89_v15 = vsel %vm63_vm2, %v88_v11, %v80_v12  ;;  %v171_v16 = vsel %vm157_vm7, %v165_v13, 0.0  ;;  %v149_v17 = vsel %vm125_vm5, %v143_v14, 0.0  ;;  %v133_v29 = vsel %vm120_vm3, %v88_v11, %v80_v12 }
  0x8c   :  { %130 = vadd.xlane.f32.xlu0 %v129_v0  ;;  %v95_v19 = vsel %vm69_vm4, %v89_v15, 0.0  ;;  %v175_v30 = vsel %vm152_vm6, %v110_v56, %v102_v55  ;;  %v66_v31 = vsel %vm63_vm2, %v65_v58, %v56_v57  ;;  %v139_v32 = vsel %vm125_vm5, %v133_v29, 0.0 }
  0x8d   :  { %v181_v33 = vsel %vm157_vm7, %v175_v30, 0.0  ;;  %v73_v35 = vsel %vm69_vm4, %v66_v31, 0.0  ;;  %v178_v37 = vsel %vm157_vm7, %v174_v36, 0.0 }
  0x93   :  { %159 = vadd.xlane.f32.xlu1 %v158_v8  ;;  %93 = vadd.xlane.f32.xlu2 %v92_v9 }
  0x94   :  { %169 = vadd.xlane.f32.xlu0 %v168_v10 }
  0x9b   :  { %172 = vadd.xlane.f32.xlu1 %v171_v16  ;;  %150 = vadd.xlane.f32.xlu2 %v149_v17 }
  0x9c   :  { %96 = vadd.xlane.f32.xlu0 %v95_v19 }
  0xa3   :  { %147 = vadd.xlane.f32.xlu1 %v146_v23  ;;  %71 = vadd.xlane.f32.xlu2 %v70_v24 }
  0xa4   :  { %137 = vadd.xlane.f32.xlu0 %v136_v28 }
  0xab   :  { %140 = vadd.xlane.f32.xlu1 %v139_v32  ;;  %182 = vadd.xlane.f32.xlu2 %v181_v33 }
  0xac   :  { %74 = vadd.xlane.f32.xlu0 %v73_v35 }
  0xb3   :  { %179 = vadd.xlane.f32.xlu1 %v178_v37 }
  0xf6   :  { %v128_v38 = vpop.xlane.xlu2 %127  ;;  %v116_v40 = vpop.xlane.xlu0 %115 }
  0xf7   :  { %v210_v55 = vrot.slane %v116_v40, 6  ;;  %v218_v61 = vrot.slane %v128_v38, 1 }
  0xfe   :  { %v119_v41 = vpop.xlane.xlu1 %118  ;;  %v163_v44 = vpop.xlane.xlu2 %162 }
  0xff   :  { %v131_v45 = vpop.xlane.xlu0 %130  ;;  %v211_v48 = vrot.slane %v119_v41, 6 }
 0x100   :  { %v219_v52 = vrot.slane %v131_v45, 1 }
 0x101   :  { %v1325_v50 = vsub.f32 %v163_v44, %v211_v48  ;;  %v1341_v1 = vadd.f32 %v211_v48, %v163_v44 }
 0x103   :  { %v261_v34 = vmul.f32 %v1325_v50, %v1325_v50  ;;  %v291_v15 = vmul.f32 %v1341_v1, %v1341_v1 }
 0x105   :  { %v265_v63 = vrot.slane %v261_v34, 1  ;;  %v295_v28 = vrot.slane %v291_v15, 1 }
 0x106   :  { %v160_v46 = vpop.xlane.xlu1 %159  ;;  %v94_v47 = vpop.xlane.xlu2 %93 }
 0x107   :  { %v1323_v49 = vpop.xlane.xlu0 %169  ;;  %v1331_v58 = vsub.f32 %v160_v46, %v210_v55  ;;  %v1343_v2 = vsub.f32 %v94_v47, %v218_v61  ;;  %v1352_v13 = vadd.f32 %v218_v61, %v94_v47  ;;  %v1360_v22 = vadd.f32 %v210_v55, %v160_v46 }
 0x108   :  { %v202_v3 = vrot.slane %v1323_v49, 1 }
 0x109   :  { %v260_v4 = vmul.f32 %v1331_v58, %v1331_v58  ;;  %v270_v14 = vmul.f32 %v1343_v2, %v1343_v2  ;;  %v280_v24 = vmul.f32 %v1352_v13, %v1352_v13  ;;  %v290_v37 = vmul.f32 %v1360_v22, %v1360_v22 }
 0x10b   :  { %v264_v16 = vrot.slane %v260_v4, 1  ;;  %v274_v23 = vrot.slane %v270_v14, 7  ;;  %v284_v38 = vrot.slane %v280_v24, 7  ;;  %v294_v34 = vrot.slane %v290_v37, 1 }
 0x10e   :  { %v173_v53 = vpop.xlane.xlu1 %172  ;;  %v151_v54 = vpop.xlane.xlu2 %150 }
 0x10f   :  { %v203_v39 = vrot.slane %v173_v53, 1  ;;  %v97_v56 = vpop.xlane.xlu0 %96 }
 0x110   :  { %v1329_v57 = vsub.f32 %v97_v56, %v219_v52  ;;  %v1335_v60 = vadd.f32 %v219_v52, %v97_v56 }
 0x111   :  { %v1333_v59 = vsub.f32 %v151_v54, %v203_v39  ;;  %v1364_v29 = vadd.f32 %v203_v39, %v151_v54 }
 0x112   :  { %v271_v62 = vmul.f32 %v1329_v57, %v1329_v57  ;;  %v281_v7 = vmul.f32 %v1335_v60, %v1335_v60 }
 0x113   :  { %v259_v0 = vmul.f32 %v1333_v59, %v1333_v59  ;;  %v301_v41 = vmul.f32 %v1364_v29, %v1364_v29 }
 0x114   :  { %v275_v6 = vrot.slane %v271_v62, 7  ;;  %v285_v17 = vrot.slane %v281_v7, 7 }
 0x115   :  { %v269_v5 = vadd.f32 %v265_v63, %v259_v0 }
 0x116   :  { %v148_v8 = vpop.xlane.xlu1 %147  ;;  %v72_v9 = vpop.xlane.xlu2 %71 }
 0x117   :  { %v279_v10 = vadd.f32 %v275_v6, %v269_v5  ;;  %v1350_v11 = vsub.f32 %v148_v8, %v202_v3  ;;  %v138_v12 = vpop.xlane.xlu0 %137  ;;  %v1374_v39 = vadd.f32 %v202_v3, %v148_v8  ;;  %v232_v56 = vsub.f32 0.0, %v72_v9 }
 0x118   :  { %v186_v48 = vrot.slane %v138_v12, 1 }
 0x119   :  { %1722 = vst [vmem:[#allocation2_spill] sm:$0xff] %v1350_v11  ;;  %v258_v19 = vmul.f32 %v1350_v11, %v1350_v11  ;;  %v289_v20 = vadd.f32 %v285_v17, %v279_v10  ;;  %v300_v3 = vmul.f32 %v1374_v39, %v1374_v39 }
 0x11a   :  { %v190_v5 = vadd.f32 %v186_v48, %v72_v9  ;;  %v224_v6 = vsub.f32 %v72_v9, %v186_v48  ;;  %v234_v8 = vadd.f32 %v232_v56, %v186_v48 }
 0x11b   :  { %v268_v21 = vadd.f32 %v264_v16, %v258_v19  ;;  %v299_v33 = vadd.f32 %v295_v28, %v289_v20 }
 0x11d   :  { %v278_v30 = vadd.f32 %v274_v23, %v268_v21  ;;  %v303_v53 = vadd.f32 %v301_v41, %v299_v33  ;;  %v240_v23 = vsub.f32 %v232_v56, %v186_v48 }
 0x11e   :  { %v141_v31 = vpop.xlane.xlu1 %140  ;;  %v183_v32 = vpop.xlane.xlu2 %182 }
 0x11f   :  { %v187_v35 = vrot.slane %v141_v31, 1  ;;  %v75_v36 = vpop.xlane.xlu0 %74  ;;  %v195_v44 = vrot.slane %v183_v32, 2  ;;  %v288_v47 = vadd.f32 %v284_v38, %v278_v30  ;;  %v305_v10 = vmul.f32 2.0, %v303_v53 }
 0x120   :  { %v233_v40 = vsub.f32 0.0, %v75_v36 }
 0x121   :  { %v191_v45 = vadd.f32 %v187_v35, %v75_v36  ;;  %v225_v46 = vsub.f32 %v75_v36, %v187_v35  ;;  %v298_v4 = vadd.f32 %v294_v34, %v288_v47  ;;  %v309_v28 = vrot.slane %v305_v10, 1 }
 0x122   :  { %v235_v49 = vadd.f32 %v233_v40, %v187_v35  ;;  %v241_v52 = vsub.f32 %v233_v40, %v187_v35 }
 0x123   :  { %v1370_v54 = vadd.f32 %v195_v44, %v191_v45  ;;  %v1372_v55 = vsub.f32 %v225_v46, %v195_v44  ;;  %v302_v21 = vadd.f32 %v300_v3, %v298_v4 }
 0x124   :  { %v237_v61 = vsub.f32 %v235_v49, %v195_v44  ;;  %v243_v62 = vadd.f32 %v241_v52, %v195_v44 }
 0x125   :  { %v245_v63 = vmul.f32 %v1370_v54, %v1370_v54  ;;  %v247_v0 = vmul.f32 %v1372_v55, %v1372_v55  ;;  %v304_v36 = vmul.f32 2.0, %v302_v21 }
 0x126   :  { %v180_v7 = vpop.xlane.xlu1 %179  ;;  %v251_v14 = vmul.f32 %v237_v61, %v237_v61  ;;  %v255_v17 = vmul.f32 %v243_v62, %v243_v62 }
 0x127   :  { %v249_v12 = vadd.f32 %v247_v0, %v245_v63  ;;  %v194_v15 = vrot.slane %v180_v7, 2  ;;  %v308_v41 = vrot.slane %v304_v36, 1 }
 0x129   :  { %v253_v16 = vadd.f32 %v251_v14, %v249_v12  ;;  %v198_v19 = vadd.f32 %v194_v15, %v190_v5  ;;  %v226_v20 = vsub.f32 %v224_v6, %v194_v15  ;;  %v236_v24 = vsub.f32 %v234_v8, %v194_v15 }
 0x12a   :  { %v242_v32 = vadd.f32 %v240_v23, %v194_v15 }
 0x12b   :  { %v257_v30 = vadd.f32 %v255_v17, %v253_v16  ;;  %v244_v31 = vmul.f32 %v198_v19, %v198_v19  ;;  %v246_v9 = vmul.f32 %v226_v20, %v226_v20  ;;  %v250_v37 = vmul.f32 %v236_v24, %v236_v24 }
 0x12c   :  { %v254_v40 = vmul.f32 %v242_v32, %v242_v32 }
 0x12d   :  { %v313_v33 = vadd.f32 %v309_v28, %v257_v30  ;;  %v248_v35 = vadd.f32 %v246_v9, %v244_v31 }
 0x12f   :  { %1112 = vrsqrt.f32 %v313_v33  ;;  %v252_v38 = vadd.f32 %v250_v37, %v248_v35  ;;  %vm333_vm8 = vcmp.eq.f32.partialorder %v313_v33, inf  ;;  %v336_v4 = vand.u32 2147483648, %v313_v33 }
 0x130   :  { %vm335_vm9 = vcmp.eq.f32.partialorder %v313_v33, 0.0  ;;  %v1400_v37 = vmov 0.2  }
 0x131   :  { %v256_v44 = vadd.f32 %v254_v40, %v252_v38  ;;  %v1408_v38 = vmov 0.3   ;;  %v1410_v40 = vmov 0.3  }
 0x133   :  { %v312_v45 = vadd.f32 %v308_v41, %v256_v44 }
 0x135   :  { %v1113_v46 = vpop.eup %1112  ;;  %1114 = vrsqrt.f32 %v312_v45  ;;  %vm321_vm10 = vcmp.eq.f32.partialorder %v312_v45, inf  ;;  %v324_v8 = vand.u32 2147483648, %v312_v45  ;;  %vm323_vm11 = vcmp.eq.f32.partialorder %v312_v45, 0.0 }
 0x136   :  { %v327_v47 = vmul.f32 %v1113_v46, %v313_v33 }
 0x138   :  { %v328_v48 = vmul.f32 %v1113_v46, %v327_v47 }
 0x13a   :  { %v329_v49 = vmul.f32 0.5, %v328_v48 }
 0x13b   :  { %v1115_v52 = vpop.eup %1114 }
 0x13c   :  { %v330_v53 = vsub.f32 1.5, %v329_v49  ;;  %v315_v34 = vmul.f32 %v1115_v52, %v312_v45 }
 0x13e   :  { %v331_v56 = vmul.f32 %v1113_v46, %v330_v53  ;;  %v316_v63 = vmul.f32 %v1115_v52, %v315_v34 }
 0x140   :  { %v332_v0 = vmul.f32 %v331_v56, %v313_v33  ;;  %v317_v5 = vmul.f32 0.5, %v316_v63 }
 0x142   :  { %v334_v6 = vsel %vm333_vm8, %v313_v33, %v332_v0  ;;  %v318_v10 = vsub.f32 1.5, %v317_v5 }
 0x143   :  { %v337_v7 = vsel %vm335_vm9, %v336_v4, %v334_v6 }
 0x144   :  { %v339_v12 = vmul.f32 0.5, %v337_v7  ;;  %v319_v14 = vmul.f32 %v1115_v52, %v318_v10 }
 0x146   :  { %v341_v15 = vadd.f32 1e-12, %v339_v12  ;;  %v320_v3 = vmul.f32 %v319_v14, %v312_v45 }
 0x148   :  { %v1383_v16 = vadd.f32 %v341_v15, %v1370_v54  ;;  %v1386_v17 = vadd.f32 %v341_v15, %v1372_v55  ;;  %v1388_v21 = vadd.f32 %v341_v15, %v237_v61  ;;  %v1390_v23 = vadd.f32 %v341_v15, %v243_v62 }
 0x149   :  { %v322_v28 = vsel %vm321_vm10, %v312_v45, %v320_v3  ;;  %v1402_v55 = vmov 0.2   ;;  %v1404_v61 = vmov 0.25   ;;  %v1406_v62 = vmov 0.25  }
 0x14a   :  { %v325_v30 = vsel %vm323_vm11, %v324_v8, %v322_v28 }
 0x14b   :  { %v338_v31 = vmul.f32 0.5, %v325_v30 }
 0x14d   :  { %v340_v9 = vadd.f32 1e-12, %v338_v31 }
 0x14f   :  { %v1392_v33 = vadd.f32 %v340_v9, %v198_v19  ;;  %v1394_v35 = vadd.f32 %v340_v9, %v226_v20  ;;  %v1396_v36 = vadd.f32 %v340_v9, %v236_v24  ;;  %v1398_v54 = vadd.f32 %v340_v9, %v242_v32 }
 0x150   :  { %v1412_v19 = vmov 1.0   ;;  %v1414_v20 = vmov 1.0  }
 0x151 LB: > { %v1723_v11 = vld [vmem:[#allocation2_spill] sm:$0xff]  ;;  %v364_v24 = vmul.f32 %v1191_v20, %v1392_v33  ;;  %v365_v32 = vmul.f32 %v1187_v19, %v1383_v16  ;;  %v367_v44 = vmul.f32 %v1179_v38, %v1333_v59  ;;  %v376_v45 = vmul.f32 %v1175_v62, %v1331_v58  ;;  %s355_s0 = sadd.s32 1, %s1195_s0   ;;  %v1163_v37 = vphi %v1400_v37, %v1731_v37   ;;  %s1195_s0 = sphi %s1416_s0, %s355_s0   ;;  %v1191_v20 = vphi %v1414_v20, %v1738_v20   ;;  %v1187_v19 = vphi %v1412_v19, %v1737_v19   ;;  %v1183_v40 = vphi %v1410_v40, %v1736_v40   ;;  %v1179_v38 = vphi %v1408_v38, %v1735_v38   ;;  %v1175_v62 = vphi %v1406_v62, %v1734_v62   ;;  %v1171_v61 = vphi %v1404_v61, %v1733_v61   ;;  %v1167_v55 = vphi %v1402_v55, %v1732_v55  }
 0x152   : > { %v366_v41 = vmul.f32 %v1183_v40, %v1723_v11  ;;  %v377_v46 = vmul.f32 %v1171_v61, %v1325_v50  ;;  %v386_v47 = vmul.f32 %v1167_v55, %v1343_v2  ;;  %v387_v48 = vmul.f32 %v1163_v37, %v1329_v57  ;;  %p352_p0 = scmp.ge.s32.totalorder %s355_s0, 96  }
 0x153   : > { %v371_v52 = vrot.slane %v367_v44, 1  ;;  %v392_v53 = vrot.slane %v1191_v20, 7  ;;  %v393_v34 = vrot.slane %v1187_v19, 7  ;;  %v380_v56 = vrot.slane %v376_v45, 2 }
 0x154   : > { %v370_v49 = vrot.slane %v366_v41, 1  ;;  %v381_v63 = vrot.slane %v377_v46, 2  ;;  %v400_v0 = vrot.slane %v1183_v40, 1  ;;  %v401_v4 = vrot.slane %v1179_v38, 1 }
 0x155   : > { %v375_v6 = vadd.f32 %v371_v52, %v365_v32  ;;  %v396_v7 = vmul.f32 %v392_v53, %v1723_v11  ;;  %v397_v10 = vmul.f32 %v393_v34, %v1333_v59  ;;  %v416_v15 = vrot.slane %v1175_v62, 2 }
 0x156   : > { %v374_v5 = vadd.f32 %v370_v49, %v364_v24  ;;  %v404_v12 = vmul.f32 %v400_v0, %v1394_v35  ;;  %v405_v14 = vmul.f32 %v401_v4, %v1386_v17  ;;  %v417_v3 = vrot.slane %v1171_v61, 2 }
 0x157   : > { %v385_v28 = vadd.f32 %v381_v63, %v375_v6  ;;  %v432_v30 = vrot.slane %v1167_v55, 6  ;;  %v433_v31 = vrot.slane %v1163_v37, 6  ;;  %v420_v32 = vmul.f32 %v416_v15, %v1352_v13 }
 0x158   : > { %v384_v8 = vadd.f32 %v380_v56, %v374_v5  ;;  %v408_v9 = vrot.slane %v404_v12, 7  ;;  %v409_v24 = vrot.slane %v405_v14, 7  ;;  %v421_v41 = vmul.f32 %v417_v3, %v1335_v60 }
 0x159   : > { %v1477_v45 = vadd.f32 %v387_v48, %v385_v28  ;;  %v436_v46 = vmul.f32 %v432_v30, %v1360_v22  ;;  %v437_v49 = vmul.f32 %v433_v31, %v1341_v1  ;;  %v424_v34 = vrot.slane %v420_v32, 7 }
 0x15a   : > { %v1475_v44 = vadd.f32 %v386_v47, %v384_v8  ;;  %v412_v52 = vadd.f32 %v408_v9, %v396_v7  ;;  %v413_v53 = vadd.f32 %v409_v24, %v397_v10  ;;  %v425_v56 = vrot.slane %v421_v41, 7 }
 0x15b   : > { %v440_v63 = vrot.slane %v436_v46, 1  ;;  %v441_v5 = vrot.slane %v437_v49, 1  ;;  %v446_v6 = vrot.slane %v1191_v20, 6  ;;  %v447_v12 = vrot.slane %v1187_v19, 6 }
 0x15c   : > { %v428_v14 = vadd.f32 %v424_v34, %v412_v52  ;;  %v429_v11 = vadd.f32 %v425_v56, %v413_v53  ;;  %v452_v47 = vmul.f32 %v400_v0, %v1352_v13  ;;  %v453_v48 = vmul.f32 %v401_v4, %v1335_v60 }
 0x15d   : > { %v450_v8 = vmul.f32 %v446_v6, %v1331_v58  ;;  %v451_v28 = vmul.f32 %v447_v12, %v1325_v50  ;;  %v462_v7 = vmul.f32 %v416_v15, %v1396_v36  ;;  %v463_v10 = vmul.f32 %v417_v3, %v1388_v21 }
 0x15e   : > { %v1489_v30 = vadd.f32 %v440_v63, %v428_v14  ;;  %v1491_v31 = vadd.f32 %v441_v5, %v429_v11  ;;  %v456_v9 = vrot.slane %v452_v47, 6  ;;  %v457_v24 = vrot.slane %v453_v48, 6 }
 0x15f   : > { %v466_v32 = vrot.slane %v462_v7, 6  ;;  %v467_v41 = vrot.slane %v463_v10, 6  ;;  %v472_v0 = vrot.slane %v1167_v55, 7  ;;  %v473_v4 = vrot.slane %v1163_v37, 7 }
 0x160   : > { %v460_v46 = vadd.f32 %v456_v9, %v450_v8  ;;  %v461_v49 = vadd.f32 %v457_v24, %v451_v28  ;;  %v486_v52 = vmul.f32 %v1191_v20, %v1343_v2  ;;  %v487_v15 = vmul.f32 %v1187_v19, %v1329_v57 }
 0x161   : > { %v476_v3 = vmul.f32 %v472_v0, %v1374_v39  ;;  %v477_v11 = vmul.f32 %v473_v4, %v1364_v29  ;;  %v488_v53 = vrot.slane %v1183_v40, 7  ;;  %v489_v34 = vrot.slane %v1179_v38, 7 }
 0x162   : > { %v470_v56 = vadd.f32 %v466_v32, %v460_v46  ;;  %v471_v63 = vadd.f32 %v467_v41, %v461_v49  ;;  %v502_v5 = vrot.slane %v1175_v62, 1  ;;  %v503_v6 = vrot.slane %v1171_v61, 1 }
 0x163   : > { %v480_v12 = vrot.slane %v476_v3, 7  ;;  %v481_v14 = vrot.slane %v477_v11, 7  ;;  %v492_v20 = vmul.f32 %v488_v53, %v1360_v22  ;;  %v493_v19 = vmul.f32 %v489_v34, %v1341_v1 }
 0x164   : > { %v506_v47 = vmul.f32 %v502_v5, %v1374_v39  ;;  %v507_v48 = vmul.f32 %v503_v6, %v1364_v29  ;;  %v516_v40 = vmul.f32 %v1167_v55, %v1398_v54  ;;  %v517_v38 = vmul.f32 %v1163_v37, %v1390_v23 }
 0x165   : > { %v484_v8 = vadd.f32 %v480_v12, %v470_v56  ;;  %v1513_v62 = vadd.f32 %v481_v14, %v471_v63  ;;  %v496_v61 = vrot.slane %v492_v20, 2  ;;  %v497_v28 = vrot.slane %v493_v19, 2 }
 0x166   : > { %v510_v7 = vrot.slane %v506_v47, 1  ;;  %v511_v10 = vrot.slane %v507_v48, 1  ;;  %v520_v9 = vmul.f32 %v1475_v44, %v1475_v44  ;;  %v521_v24 = vmul.f32 %v1477_v45, %v1477_v45 }
 0x167   : > { %v500_v32 = vadd.f32 %v496_v61, %v486_v52  ;;  %v501_v41 = vadd.f32 %v497_v28, %v487_v15  ;;  %v522_v55 = vmul.f32 %v1489_v30, %v1489_v30  ;;  %v523_v37 = vmul.f32 %v1491_v31, %v1491_v31 }
 0x168   : > { %v532_v0 = vmul.f32 %v484_v8, %v484_v8  ;;  %v533_v4 = vmul.f32 %v1513_v62, %v1513_v62  ;;  %vm788_vm5 = vcmask (%p352_p0), 1040384  }
 0x169   : > { %v514_v46 = vadd.f32 %v510_v7, %v500_v32  ;;  %v515_v49 = vadd.f32 %v511_v10, %v501_v41  ;;  %v526_v3 = vrot.slane %v522_v55, 1  ;;  %v527_v11 = vrot.slane %v523_v37, 1 }
 0x16a   : > { %v536_v53 = vrot.slane %v532_v0, 2  ;;  %v537_v34 = vrot.slane %v533_v4, 2 }
 0x16b   : > { %v518_v56 = vadd.f32 %v516_v40, %v514_v46  ;;  %v519_v63 = vadd.f32 %v517_v38, %v515_v49  ;;  %v530_v52 = vadd.f32 %v526_v3, %v520_v9  ;;  %v531_v15 = vadd.f32 %v527_v11, %v521_v24 }
 0x16d   : > { %v540_v5 = vadd.f32 %v536_v53, %v530_v52  ;;  %v541_v6 = vadd.f32 %v537_v34, %v531_v15  ;;  %v542_v12 = vmul.f32 %v518_v56, %v518_v56  ;;  %v543_v14 = vmul.f32 %v519_v63, %v519_v63 }
 0x16f   : > { %v544_v20 = vadd.f32 %v542_v12, %v540_v5  ;;  %v545_v19 = vadd.f32 %v543_v14, %v541_v6 }
 0x171   : > { %v546_v47 = vadd.f32 1e-30, %v544_v20  ;;  %v547_v48 = vadd.f32 1e-30, %v545_v19 }
 0x173   : > { %1116 = vrsqrt.f32 %v546_v47  ;;  %vm554_vm12 = vweird.f32 %v546_v47  ;;  %vm564_vm14 = vweird.f32 %v547_v48 }
 0x174   : > { %1118 = vrsqrt.f32 %v547_v48 }
 0x179   : > { %v1117_v61 = vpop.eup %1116 }
 0x17a   : > { %v1119_v28 = vpop.eup %1118  ;;  %v549_v7 = vmul.f32 %v1117_v61, %v546_v47  ;;  %vm555_vm13 = vweird.f32 %v1117_v61 }
 0x17b   : > { %v559_v10 = vmul.f32 %v1119_v28, %v547_v48  ;;  %vm565_vm15 = vweird.f32 %v1119_v28  ;;  %vm556_vm1 = vmor %vm554_vm12, %vm555_vm13 }
 0x17c   : > { %v550_v32 = vmul.f32 %v1117_v61, %v549_v7  ;;  %vm566_vm4 = vmor %vm564_vm14, %vm565_vm15 }
 0x17d   : > { %v560_v41 = vmul.f32 %v1119_v28, %v559_v10 }
 0x17e   : > { %v551_v40 = vmul.f32 0.5, %v550_v32 }
 0x17f   : > { %v561_v38 = vmul.f32 0.5, %v560_v41 }
 0x180   : > { %v552_v9 = vsub.f32 1.5, %v551_v40 }
 0x181   : > { %v562_v24 = vsub.f32 1.5, %v561_v38 }
 0x182   : > { %v553_v55 = vmul.f32 %v1117_v61, %v552_v9 }
 0x183   : > { %v563_v37 = vmul.f32 %v1119_v28, %v562_v24 }
 0x184   : > { %v557_v0 = vsel %vm556_vm1, %v1117_v61, %v553_v55 }
 0x185   : > { %v567_v4 = vsel %vm566_vm4, %v1119_v28, %v563_v37  ;;  %v1526_v20 = vmul.f32 %v557_v0, %v1475_v44   ;;  %v572_v49 = vrot.slane %v557_v0, 7  ;;  %v578_v3 = vrot.slane %v557_v0, 6 }
 0x186   : > { %v1529_v19 = vmul.f32 %v567_v4, %v1477_v45   ;;  %v573_v53 = vrot.slane %v567_v4, 7  ;;  %v579_v34 = vrot.slane %v567_v4, 6  ;;  %v1531_v55 = vmul.f32 %v557_v0, %v518_v56  }
 0x187   : > { %v1724_v46 = vmov %v1526_v20  ;;  %v1534_v40 = vmul.f32 %v572_v49, %v1489_v30   ;;  %v1536_v5 = vmul.f32 %v578_v3, %v484_v8   ;;  %v1538_v37 = vmul.f32 %v567_v4, %v519_v63   ;;  %354 = sbr.rel (!%p352_p0) target bundleno = 337 (0x151), region = 31 }
 0x188   : > { %v1725_v11 = vmov %v1529_v19  ;;  %v1726_v52 = vmov %v1531_v55  ;;  %v1541_v38 = vmul.f32 %v573_v53, %v1491_v31   ;;  %v1544_v61 = vmul.f32 %v579_v34, %v1513_v62  }
 0x189   : > { %v1727_v15 = vmov %v1534_v40  ;;  %v1728_v6 = vmov %v1538_v37  ;;  %v1732_v55 = vmov %v1726_v52  ;;  %v1734_v62 = vmov %v1536_v5 }
 0x18a   : > { %v1729_v44 = vmov %v1541_v38  ;;  %v1730_v12 = vmov %v1544_v61  ;;  %v1731_v37 = vmov %v1728_v6  ;;  %v1736_v40 = vmov %v1727_v15 }
 0x18b   : > { %v1733_v61 = vmov %v1730_v12  ;;  %v1735_v38 = vmov %v1729_v44  ;;  %v1737_v19 = vmov %v1725_v11  ;;  %v1738_v20 = vmov %v1724_v46 }
 0x18c   :  { %v604_v45 = vrot.slane %v1536_v5, 1  ;;  %v610_v30 = vmul.f32 %v1726_v52, %v1724_v46  ;;  %v624_v31 = vrot.slane %v1726_v52, 7  ;;  %v1198_v8 = vmov 0  }
 0x18d   :  { %1120 = vset.pattern.permute.xlu0 %v1198_v8  ;;  %1122 = vset.pattern.permute.xlu2 %v1198_v8  ;;  %v630_v56 = vrot.slane %v1536_v5, 2  ;;  %v1580_v63 = vmul.f32 %v1536_v5, %v1536_v5  ;;  %v588_v14 = vmul.f32 %v1726_v52, %v1726_v52  ;;  %v605_v50 = vrot.slane %v1730_v12, 1 }
 0x18e   :  { %v608_v57 = vmul.f32 %v604_v45, %v1727_v15  ;;  %v614_v58 = vrot.slane %v610_v30, 7  ;;  %1121 = vset.pattern.permute.xlu1 %v1198_v8  ;;  %v611_v59 = vmul.f32 %v1728_v6, %v1725_v11  ;;  %v1589_v60 = vmul.f32 %v624_v31, %v1727_v15 }
 0x18f   :  { %v1592_v1 = vmul.f32 %v630_v56, %v1724_v46  ;;  %v592_v2 = vrot.slane %v588_v14, 6  ;;  %v609_v13 = vmul.f32 %v605_v50, %v1729_v44  ;;  %v625_v39 = vrot.slane %v1728_v6, 7 }
 0x190   :  { %v618_v22 = vsub.f32 %v608_v57, %v614_v58  ;;  %v615_v29 = vrot.slane %v611_v59, 7  ;;  %v631_v16 = vrot.slane %v1730_v12, 2  ;;  %v1601_v23 = vmul.f32 %v1730_v12, %v1730_v12 }
 0x191   :  { %v638_v17 = vrot.slane %v1592_v1, 7  ;;  %v596_v21 = vadd.f32 %v592_v2, %v1580_v63  ;;  %v589_v33 = vmul.f32 %v1728_v6, %v1728_v6  ;;  %v1610_v20 = vmul.f32 %v625_v39, %v1729_v44 }
 0x192   :  { %v620_v35 = vmul.f32 2.0, %v618_v22  ;;  %v1606_v36 = vmul.f32 %v631_v16, %v1725_v11  ;;  %v619_v47 = vsub.f32 %v609_v13, %v615_v29  ;;  %v650_v10 = vmul.f32 %v1727_v15, %v1727_v15 }
 0x193   :  { %v642_v54 = vadd.f32 %v638_v17, %v1589_v60  ;;  %v598_v62 = vmul.f32 2.0, %v596_v21  ;;  %v593_v19 = vrot.slane %v589_v33, 6  ;;  %v652_v32 = vrot.slane %v588_v14, 7 }
 0x194   :  { %732 = vperm.xlu0 %1120, %v620_v35   ;;  %v639_v48 = vrot.slane %v1606_v36, 7  ;;  %v621_v38 = vmul.f32 2.0, %v619_v47  ;;  %v671_v37 = vrot.slane %v1729_v44, 1  ;;  %v670_v0 = vrot.slane %v1727_v15, 1 }
 0x195   :  { %v644_v61 = vmul.f32 2.0, %v642_v54  ;;  %v600_v28 = vsub.f32 1.0, %v598_v62  ;;  %v597_v7 = vadd.f32 %v593_v19, %v1601_v23  ;;  %v656_v9 = vadd.f32 %v652_v32, %v650_v10 }
 0x196   :  { %v643_v41 = vadd.f32 %v639_v48, %v1610_v20  ;;  %v646_v4 = vadd.f32 %v614_v58, %v608_v57  ;;  %v651_v49 = vmul.f32 %v1729_v44, %v1729_v44  ;;  %v653_v3 = vrot.slane %v589_v33, 7 }
 0x197   :  { %758 = vperm.xlu2 %1122, %v644_v61   ;;  %708 = vperm.xlu1 %1121, %v600_v28   ;;  %v599_v40 = vmul.f32 2.0, %v597_v7  ;;  %v647_v53 = vadd.f32 %v615_v29, %v609_v13  ;;  %v663_v34 = vrot.slane %v1728_v6, 6  ;;  %v658_v45 = vmul.f32 2.0, %v656_v9 }
 0x198   :  { %v645_v24 = vmul.f32 2.0, %v643_v41  ;;  %v675_v30 = vmul.f32 %v671_v37, %v1725_v11  ;;  %v662_v31 = vrot.slane %v1726_v52, 6  ;;  %v674_v8 = vmul.f32 %v670_v0, %v1724_v46 }
 0x199   :  { %v601_v55 = vsub.f32 1.0, %v599_v40  ;;  %v648_v56 = vmul.f32 2.0, %v646_v4  ;;  %v657_v15 = vadd.f32 %v653_v3, %v651_v49  ;;  %v649_v14 = vmul.f32 2.0, %v647_v53 }
 0x19a   :  { %v667_v50 = vmul.f32 %v663_v34, %v1730_v12  ;;  %v660_v57 = vsub.f32 1.0, %v658_v45  ;;  %v679_v44 = vrot.slane %v675_v30, 6  ;;  %v666_v58 = vmul.f32 %v662_v31, %v1536_v5 }
 0x19b   :  { %v678_v59 = vrot.slane %v674_v8, 6  ;;  %v659_v6 = vmul.f32 2.0, %v657_v15  ;;  %v696_v22 = vrot.slane %v1580_v63, 1  ;;  %v686_v12 = vsub.f32 %v1589_v60, %v638_v17 }
 0x19c   :  { %737 = vperm.xlu0 %1120, %v621_v38   ;;  %v683_v1 = vsub.f32 %v667_v50, %v679_v44  ;;  %v691_v29 = vadd.f32 %v679_v44, %v667_v50  ;;  %v697_v5 = vrot.slane %v1601_v23, 1  ;;  %v687_v36 = vsub.f32 %v1610_v20, %v639_v48 }
 0x19d   :  { %v682_v11 = vsub.f32 %v666_v58, %v678_v59  ;;  %v661_v2 = vsub.f32 1.0, %v659_v6  ;;  %v690_v46 = vadd.f32 %v678_v59, %v666_v58  ;;  %v688_v16 = vmul.f32 2.0, %v686_v12 }
 0x19e   :  { %v685_v52 = vmul.f32 2.0, %v683_v1  ;;  %v693_v21 = vmul.f32 2.0, %v691_v29  ;;  %v701_v33 = vadd.f32 %v697_v5, %v651_v49  ;;  %v700_v35 = vadd.f32 %v696_v22, %v650_v10 }
 0x19f   :  { %763 = vperm.xlu2 %1122, %v645_v24   ;;  %713 = vperm.xlu1 %1121, %v601_v55   ;;  %v684_v13 = vmul.f32 2.0, %v682_v11  ;;  %v692_v39 = vmul.f32 2.0, %v690_v46  ;;  %v689_v63 = vmul.f32 2.0, %v687_v36  ;;  %v740_v17 = vrot.slane %v1241_v26, 7 }
 0x1a0   :  { %v703_v54 = vmul.f32 2.0, %v701_v33  ;;  %v702_v62 = vmul.f32 2.0, %v700_v35  ;;  %v766_v28 = vrot.slane %v1243_v27, 1  ;;  %v720_v48 = vrot.slane %v1243_v27, 6 }
 0x1a1   :  { %v741_v20 = vsel %vm120_vm3, %v740_v17, %v1243_v27  ;;  %v721_v7 = vrot.slane %v1241_v26, 5  ;;  %v768_v32 = vrot.slane %v1274_v51, 1  ;;  %v742_v41 = vrot.slane %v1262_v43, 7 }
 0x1a2   :  { %v705_v19 = vsub.f32 1.0, %v703_v54  ;;  %v704_v47 = vsub.f32 1.0, %v702_v62  ;;  %v723_v40 = vrot.slane %v1274_v51, 6  ;;  %v724_v38 = vrot.slane %v1262_v43, 5 }
 0x1a3   :  { %v743_v24 = vsel %vm120_vm3, %v742_v41, %v1274_v51  ;;  %v1645_v55 = vsel %vm120_vm3, %v1241_v26, %v766_v28  ;;  %v722_v37 = vsel %vm152_vm6, %v721_v7, %v720_v48  ;;  %v1650_v0 = vsel %vm120_vm3, %v1262_v43, %v768_v32 }
 0x1a4   :  { %793 = vperm.xlu0 %1120, %v648_v56   ;;  %v725_v3 = vsel %vm152_vm6, %v724_v38, %v723_v40  ;;  %v804_v1 = vrot.slane %v1274_v51, 7  ;;  %v805_v11 = vrot.slane %v1262_v43, 6  ;;  %v801_v46 = vrot.slane %v1243_v27, 7 }
 0x1a5   :  { %v802_v22 = vrot.slane %v1241_v26, 6  ;;  %v1199_v33 = vmov 3.0   ;;  %v851_v32 = vrot.slane %v1239_v25, 1 }
 0x1a6   :  { %v806_v5 = vsel %vm120_vm3, %v805_v11, %v804_v1  ;;  %1123 = vrcp.f32 %v1199_v33 }
 0x1a7   :  { %813 = vperm.xlu2 %1122, %v660_v57   ;;  %798 = vperm.xlu1 %1121, %v649_v14  }
 0x1ac   :  { %818 = vperm.xlu0 %1120, %v661_v2   ;;  %v1678_v28 = vpop.eup %1123 }
 0x1af   :  { %832 = vperm.xlu2 %1122, %v685_v52   ;;  %827 = vperm.xlu1 %1121, %v684_v13   ;;  %v836_v52 = vsel %vm152_vm6, %v742_v41, %v1274_v51  ;;  %v835_v51 = vsel %vm152_vm6, %v740_v17, %v1243_v27 }
 0x1b4   :  { %871 = vperm.xlu0 %1120, %v692_v39  }
 0x1b7   :  { %859 = vperm.xlu2 %1122, %v688_v16   ;;  %876 = vperm.xlu1 %1121, %v693_v21   ;;  %v803_v16 = vsel %vm120_vm3, %v802_v22, %v801_v46  ;;  %vm932_vm3 = vweird.f32 %v1678_v28 }
 0x1bc   :  { %864 = vperm.xlu0 %1120, %v689_v63  }
 0x1bf   :  { %900 = vperm.xlu2 %1122, %v705_v19   ;;  %895 = vperm.xlu1 %1121, %v704_v47   ;;  %v852_v47 = vrot.slane %v1260_v42, 1 }
 0x1f1   :  { %v759_v60 = vpop.permute.xlu2 %758 }
 0x1f2   :  { %v772_v53 = vmul.f32 %v1645_v55, %v759_v60 }
 0x1f4   :  { %v776_v14 = vrot.slane %v772_v53, 7 }
 0x1f9   :  { %v764_v23 = vpop.permute.xlu2 %763 }
 0x1fa   :  { %v773_v31 = vmul.f32 %v1650_v0, %v764_v23 }
 0x1fc   :  { %v777_v44 = vrot.slane %v773_v31, 7 }
 0x201   :  { %v814_v34 = vpop.permute.xlu2 %813 }
 0x202   :  { %v821_v60 = vmul.f32 %v814_v34, %v741_v20 }
 0x206   :  { %v733_v61 = vpop.permute.xlu0 %732 }
 0x207   :  { %v746_v9 = vmul.f32 %v741_v20, %v733_v61 }
 0x209   :  { %v709_v10 = vpop.permute.xlu1 %708  ;;  %v750_v45 = vrot.slane %v746_v9, 7  ;;  %v833_v13 = vpop.permute.xlu2 %832 }
 0x20a   :  { %v728_v30 = vmul.f32 %v722_v37, %v709_v10  ;;  %v840_v39 = vmul.f32 %v836_v52, %v833_v13  ;;  %v879_v37 = vsel %vm152_vm6, %v802_v22, %v801_v46 }
 0x20c   :  { %v754_v50 = vadd.f32 %v750_v45, %v728_v30  ;;  %v844_v62 = vrot.slane %v840_v39, 1 }
 0x20e   :  { %v738_v4 = vpop.permute.xlu0 %737  ;;  %v780_v6 = vadd.f32 %v776_v14, %v754_v50 }
 0x20f   :  { %v747_v49 = vmul.f32 %v743_v24, %v738_v4 }
 0x210   :  { %v784_v29 = vrot.slane %v780_v6, 1 }
 0x211   :  { %v751_v8 = vrot.slane %v747_v49, 7  ;;  %v714_v56 = vpop.permute.xlu1 %713  ;;  %v860_v48 = vpop.permute.xlu2 %859  ;;  %v880_v49 = vsel %vm152_vm6, %v805_v11, %v804_v1  ;;  %vm1000_vm6 = vcmask 17408  }
 0x212   :  { %v729_v15 = vmul.f32 %v725_v3, %v714_v56  ;;  %v1671_v54 = vsel %vm788_vm5, %v1239_v25, %v784_v29  ;;  %v928_v3 = vmul.f32 3.0, %v1678_v28  ;;  %v867_v22 = vmul.f32 %v860_v48, %v803_v16 }
 0x213   :  { %v913_v17 = vsel %vm14_vm0, %v1671_v54, 0.0 }
 0x214   :  { %v755_v57 = vadd.f32 %v751_v8, %v729_v15 }
 0x216   :  { %v794_v58 = vpop.permute.xlu0 %793  ;;  %v781_v59 = vadd.f32 %v777_v44, %v755_v57  ;;  %v929_v57 = vsub.f32 1.0, %v928_v3 }
 0x217   :  { %v809_v26 = vmul.f32 %v803_v16, %v794_v58 }
 0x218   :  { %v785_v12 = vrot.slane %v781_v59, 1 }
 0x219   :  { %v799_v2 = vpop.permute.xlu1 %798  ;;  %v823_v7 = vadd.f32 %v821_v60, %v809_v26  ;;  %v901_v59 = vpop.permute.xlu2 %900 }
 0x21a   :  { %v810_v43 = vmul.f32 %v806_v5, %v799_v2  ;;  %v1667_v36 = vsel %vm788_vm5, %v1260_v42, %v785_v12  ;;  %v930_v12 = vmul.f32 %v1678_v28, %v929_v57  ;;  %v904_v39 = vmul.f32 %v901_v59, %v1650_v0 }
 0x21b   :  { %v920_v61 = vsel %vm14_vm0, %v1667_v36, 0.0 }
 0x21c   :  { %v921_v40 = vrot.slane %v920_v61, 4  ;;  %v931_v0 = vadd.f32 %v1678_v28, %v930_v12 }
 0x21e   :  { %v819_v21 = vpop.permute.xlu0 %818  ;;  %v922_v45 = vadd.f32 %v921_v40, %v920_v61  ;;  %v933_v40 = vsel %vm932_vm3, %v1678_v28, %v931_v0 }
 0x21f   :  { %v822_v35 = vmul.f32 %v819_v21, %v743_v24  ;;  %v914_v24 = vrot.slane %v913_v17, 4 }
 0x220   :  { %v923_v58 = vrot.slane %v922_v45, 2 }
 0x221   :  { %v824_v63 = vadd.f32 %v822_v35, %v810_v43  ;;  %v828_v19 = vpop.permute.xlu1 %827  ;;  %v915_v56 = vadd.f32 %v914_v24, %v913_v17  ;;  %v908_v43 = vrot.slane %v1260_v42, 2 }
 0x222   :  { %v839_v23 = vmul.f32 %v835_v51, %v828_v19  ;;  %v924_v35 = vadd.f32 %v923_v58, %v922_v45 }
 0x223   :  { %v848_v27 = vadd.f32 %v844_v62, %v824_v63  ;;  %v916_v11 = vrot.slane %v915_v56, 2  ;;  %v907_v62 = vrot.slane %v1239_v25, 2 }
 0x224   :  { %v843_v10 = vrot.slane %v839_v23, 1  ;;  %v925_v23 = vrot.slane %v924_v35, 1 }
 0x225   :  { %v1682_v41 = vsel %vm788_vm5, %v852_v47, %v848_v27  ;;  %v917_v63 = vadd.f32 %v916_v11, %v915_v56 }
 0x226   :  { %v847_v20 = vadd.f32 %v843_v10, %v823_v7  ;;  %v872_v38 = vpop.permute.xlu0 %871  ;;  %v943_v9 = vsel %vm14_vm0, %v1682_v41, 0.0  ;;  %v926_v10 = vadd.f32 %v925_v23, %v924_v35 }
 0x227   :  { %v944_v4 = vrot.slane %v943_v9, 4  ;;  %v883_v8 = vmul.f32 %v879_v37, %v872_v38  ;;  %v918_v27 = vrot.slane %v917_v63, 1 }
 0x228   :  { %v1690_v53 = vsel %vm788_vm5, %v851_v32, %v847_v20 }
 0x229   :  { %v877_v34 = vpop.permute.xlu1 %876  ;;  %v945_v30 = vadd.f32 %v944_v4, %v943_v9  ;;  %v936_v31 = vsel %vm14_vm0, %v1690_v53, 0.0  ;;  %v887_v6 = vrot.slane %v883_v8, 1  ;;  %v919_v20 = vadd.f32 %v918_v27, %v917_v63 }
 0x22a   :  { %v937_v15 = vrot.slane %v936_v31, 4  ;;  %v884_v14 = vmul.f32 %v880_v49, %v877_v34  ;;  %v935_v49 = vmul.f32 %v933_v40, %v926_v10 }
 0x22b   :  { %v946_v50 = vrot.slane %v945_v30, 2  ;;  %v891_v51 = vadd.f32 %v887_v6, %v867_v22  ;;  %v934_v34 = vmul.f32 %v933_v40, %v919_v20 }
 0x22c   :  { %v938_v44 = vadd.f32 %v937_v15, %v936_v31  ;;  %v888_v52 = vrot.slane %v884_v14, 1  ;;  %v969_v14 = vsub.f32 %v1667_v36, %v935_v49 }
 0x22d   :  { %v947_v46 = vadd.f32 %v946_v50, %v945_v30  ;;  %v968_v50 = vsub.f32 %v1671_v54, %v934_v34  ;;  %v994_v54 = vlaneseq }
 0x22e   :  { %v865_v1 = vpop.permute.xlu0 %864  ;;  %v939_v2 = vrot.slane %v938_v44, 2  ;;  %v971_v6 = vmul.f32 %v969_v14, %v969_v14 }
 0x22f   :  { %v868_v13 = vmul.f32 %v865_v1, %v806_v5  ;;  %v948_v5 = vrot.slane %v947_v46, 1  ;;  %v970_v11 = vmul.f32 %v968_v50, %v968_v50 }
 0x230   :  { %v940_v29 = vadd.f32 %v939_v2, %v938_v44 }
 0x231   :  { %v892_v21 = vadd.f32 %v888_v52, %v868_v13  ;;  %v896_v33 = vpop.permute.xlu1 %895 }
 0x232   :  { %v903_v26 = vmul.f32 %v896_v33, %v1645_v55  ;;  %v941_v16 = vrot.slane %v940_v29, 1  ;;  %v949_v55 = vadd.f32 %v948_v5, %v947_v46 }
 0x233   :  { %v906_v19 = vadd.f32 %v904_v39, %v892_v21 }
 0x234   :  { %v905_v47 = vadd.f32 %v903_v26, %v891_v51  ;;  %v942_v48 = vadd.f32 %v941_v16, %v940_v29  ;;  %v951_v9 = vmul.f32 %v949_v55, %v933_v40  ;;  %v995_v29 = vand.u32 127, %v994_v54 }
 0x235   :  { %v912_v60 = vsel %vm788_vm5, %v908_v43, %v906_v19 }
 0x236   :  { %v959_v61 = vsel %vm14_vm0, %v912_v60, 0.0  ;;  %v911_v42 = vsel %vm788_vm5, %v907_v62, %v905_v47  ;;  %v950_v37 = vmul.f32 %v942_v48, %v933_v40  ;;  %v973_v31 = vsub.f32 %v1682_v41, %v951_v9 }
 0x237   :  { %v960_v17 = vrot.slane %v959_v61, 4  ;;  %v952_v25 = vsel %vm14_vm0, %v911_v42, 0.0 }
 0x238   :  { %v953_v7 = vrot.slane %v952_v25, 4  ;;  %v972_v56 = vsub.f32 %v1690_v53, %v950_v37  ;;  %v975_v44 = vmul.f32 %v973_v31, %v973_v31 }
 0x239   :  { %v961_v32 = vadd.f32 %v960_v17, %v959_v61 }
 0x23a   :  { %v954_v38 = vadd.f32 %v953_v7, %v952_v25  ;;  %v974_v59 = vmul.f32 %v972_v56, %v972_v56  ;;  %v977_v52 = vadd.f32 %v975_v44, %v971_v6 }
 0x23b   :  { %v962_v24 = vrot.slane %v961_v32, 2 }
 0x23c   :  { %v955_v4 = vrot.slane %v954_v38, 2  ;;  %v976_v41 = vadd.f32 %v974_v59, %v970_v11 }
 0x23d   :  { %v963_v3 = vadd.f32 %v962_v24, %v961_v32 }
 0x23e   :  { %v956_v45 = vadd.f32 %v955_v4, %v954_v38 }
 0x23f   :  { %v964_v30 = vrot.slane %v963_v3, 1 }
 0x240   :  { %v957_v8 = vrot.slane %v956_v45, 1 }
 0x241   :  { %v965_v15 = vadd.f32 %v964_v30, %v963_v3 }
 0x242   :  { %v958_v28 = vadd.f32 %v957_v8, %v956_v45 }
 0x243   :  { %v967_v57 = vmul.f32 %v965_v15, %v933_v40 }
 0x244   :  { %v966_v58 = vmul.f32 %v958_v28, %v933_v40 }
 0x245   :  { %v979_v1 = vsub.f32 %v912_v60, %v967_v57 }
 0x246   :  { %v978_v2 = vsub.f32 %v911_v42, %v966_v58 }
 0x247   :  { %v981_v13 = vmul.f32 %v979_v1, %v979_v1 }
 0x248   :  { %v980_v46 = vmul.f32 %v978_v2, %v978_v2 }
 0x249   :  { %v983_v22 = vadd.f32 %v981_v13, %v977_v52 }
 0x24a   :  { %v982_v53 = vadd.f32 %v980_v46, %v976_v41 }
 0x24b   :  { %v987_v12 = vsel %vm14_vm0, %v983_v22, 0.0 }
 0x24c   :  { %988 = vadd.xlane.f32.xlu1 %v987_v12  ;;  %v984_v36 = vsel %vm14_vm0, %v982_v53, 0.0 }
 0x24d   :  { %985 = vadd.xlane.f32.xlu0 %v984_v36 }
 0x2bf   :  { %v989_v39 = vpop.xlane.xlu1 %988 }
 0x2c0   :  { %v986_v21 = vpop.xlane.xlu0 %985  ;;  %v991_v33 = vmul.f32 %v989_v39, %v1234_v18 }
 0x2c1   :  { %v990_v43 = vmul.f32 %v986_v21, %v1234_v18 }
 0x2c2   :  { %v997_v35 = vperm.slane %v991_v33, %v995_v29 }
 0x2c3   :  { %v996_v51 = vperm.slane %v990_v43, %v995_v29 }
 0x2c5   :  { %v998_v26 = vsel %vm63_vm2, %v997_v35, %v996_v51 }
 0x2c6   :  { %1001 = vst.msk [vmem:[%s1719_s1] sm:$0x3] %vm1000_vm6, %v998_v26 }

</bundles_post_ra>
